<compile_context>
chip_gen: v6e
topology: v6e:2x2x1
jax: 0.10.0
libtpu: 0.0.40
codegen_flags: <defaults>
</compile_context>

<pallas_src>
import functools

import jax
import jax.numpy as jnp
from jax.experimental import pallas as pl
from jax.experimental.pallas import tpu as pltpu


def _make_divisible(ch, divisor=8, min_ch=None):
    if min_ch is None:
        min_ch = divisor
    new_ch = max(min_ch, int(ch + divisor / 2) // divisor * divisor)
    if new_ch < 0.9 * ch:
        new_ch += divisor
    return new_ch


# ---------------------------------------------------------------------------
# Pallas kernel: one batch element through the whole Residual_Se stack.
# ---------------------------------------------------------------------------
def _residual_se_kernel(x_ref, mask_ref,
                        w1_ref, b1_ref, a1_ref,
                        wdw_ref, b2_ref, a2_ref,
                        wfc1_ref, bfc1_ref,
                        wfc2_ref, bfc2_ref,
                        w4_ref, b4_ref,
                        o_ref,
                        *, num_block, hsz, wsz, pad):
    hw = hsz * wsz
    g = w1_ref.shape[1]                       # expansion channels ("groups")

    # Column-validity masks for the +-1 horizontal taps (built in the wrapper).
    masks = mask_ref[...]                     # (2, HW) f32 in {0,1}
    m_neg = masks[0:1, :]                     # valid where w-1 >= 0
    m_pos = masks[1:2, :]                     # valid where w+1 <  W
    zpad = jnp.zeros((g, pad), jnp.float32)

    cur = x_ref[0].astype(jnp.float32)        # (C, HW), lane-dense

    for blk in range(num_block):              # unrolled: num_block is static
        # --- ConvBlock 1: 1x1 conv (BN scale folded into w1) + bias + PReLU --
        t = jnp.dot(w1_ref[blk], cur, preferred_element_type=jnp.float32)
        t = t + b1_ref[blk]
        t = jnp.where(t >= 0.0, t, a1_ref[blk] * t)                  # (G, HW)

        # --- ConvBlock 2: depthwise 3x3, stride 1, pad 1 (BN folded) + PReLU -
        # Zero-pad the flattened row-major spatial axis; a shift by (dh, dw)
        # is then a statically-offset window of the padded buffer.  The zero
        # pad absorbs out-of-image rows; column masks kill w wrap-around.
        tp = jnp.concatenate([zpad, t, zpad], axis=1)                # (G, pad+HW+pad)
        acc = jnp.zeros((g, hw), jnp.float32)
        for j, dw in enumerate((-1, 0, 1)):
            part = jnp.zeros((g, hw), jnp.float32)
            for i, dh in enumerate((-1, 0, 1)):
                off = pad + dh * wsz + dw
                window = tp[:, off:off + hw]                         # t[:, s + dh*W + dw]
                part = part + window * wdw_ref[blk, i * 3 + j]       # (G,HW)*(G,1)
            if dw == -1:
                part = part * m_neg
            elif dw == 1:
                part = part * m_pos
            acc = acc + part
        t = acc + b2_ref[blk]
        t = jnp.where(t >= 0.0, t, a2_ref[blk] * t)                  # (G, HW)

        # --- SqueezeExcitation: avgpool -> fc1 -> relu -> fc2 -> hardsigmoid -
        pool = jnp.broadcast_to(jnp.mean(t, axis=1, keepdims=True), (g, hw))
        z = jnp.dot(wfc1_ref[blk], pool, preferred_element_type=jnp.float32)
        z = jnp.maximum(z + bfc1_ref[blk], 0.0)                      # (S, HW)
        z = jnp.dot(wfc2_ref[blk], z, preferred_element_type=jnp.float32)
        gate = jnp.clip((z + bfc2_ref[blk]) / 6.0 + 0.5, 0.0, 1.0)   # (G, HW)
        t = t * gate

        # --- LinearBlock: 1x1 conv (BN folded) + bias, then residual add -----
        y = jnp.dot(w4_ref[blk], t, preferred_element_type=jnp.float32)
        cur = cur + y + b4_ref[blk]                                  # (C, HW)

    o_ref[0] = cur.astype(o_ref.dtype)


def _replicated_spec(shape):
    return pl.BlockSpec(shape, lambda *_: (0,) * len(shape))


def residual_se_forward(x_nchw, stacked):
    """Residual_Se forward.  x_nchw: (N, C, H, W) f32, stacked: folded params."""
    n, c, hsz, wsz = x_nchw.shape
    hw = hsz * wsz
    nb = stacked["w1"].shape[0]
    pad = 128                                   # lane-aligned zero pad >= W+1

    x = x_nchw.reshape(n, c, hw).astype(jnp.float32)

    # Column masks for the depthwise +-1 horizontal taps (computed once here
    # so the kernel needs no in-kernel iota/mod arithmetic).
    col = jnp.arange(hw, dtype=jnp.int32) % wsz
    col_masks = jnp.stack([col >= 1, col <= wsz - 2]).astype(jnp.float32)  # (2, HW)

    names = ("w1", "b1", "a1", "wdw", "b2", "a2",
             "wfc1", "bfc1", "wfc2", "bfc2", "w4", "b4")
    weights = tuple(stacked[k] for k in names)

    kernel = functools.partial(_residual_se_kernel,
                               num_block=nb, hsz=hsz, wsz=wsz, pad=pad)

    act_spec = pl.BlockSpec((1, c, hw), lambda b: (b, 0, 0))
    in_specs = ([act_spec, _replicated_spec(col_masks.shape)]
                + [_replicated_spec(wa.shape) for wa in weights])

    out = pl.pallas_call(
        kernel,
        out_shape=jax.ShapeDtypeStruct((n, c, hw), jnp.float32),
        grid_spec=pltpu.PrefetchScalarGridSpec(
            num_scalar_prefetch=0,
            grid=(n,),
            in_specs=in_specs,
            out_specs=act_spec,
        ),
        compiler_params=pltpu.CompilerParams(
            dimension_semantics=("parallel",)),
    )(x, col_masks, *weights)

    return out.reshape(n, c, hsz, wsz)


# ---------------------------------------------------------------------------
# Parameter construction (torch layouts) + BN folding into kernel layouts.
# ---------------------------------------------------------------------------
def _bn_init(key, ch):
    k1, k2, k3, k4 = jax.random.split(key, 4)
    return {
        "gamma": 1.0 + 0.1 * jax.random.normal(k1, (ch,), jnp.float32),
        "beta": 0.1 * jax.random.normal(k2, (ch,), jnp.float32),
        "mean": 0.1 * jax.random.normal(k3, (ch,), jnp.float32),
        "var": jnp.abs(1.0 + 0.1 * jax.random.normal(k4, (ch,), jnp.float32)),
    }


def _init_block(key, c, g, s):
    ks = jax.random.split(key, 12)
    return {
        "w1": 0.3 * jax.random.normal(ks[0], (g, c, 1, 1), jnp.float32),
        "bn1": _bn_init(ks[1], g),
        "a1": 0.25 + 0.05 * jax.random.normal(ks[2], (g,), jnp.float32),
        "wdw": 0.3 * jax.random.normal(ks[3], (g, 1, 3, 3), jnp.float32),
        "bn2": _bn_init(ks[4], g),
        "a2": 0.25 + 0.05 * jax.random.normal(ks[5], (g,), jnp.float32),
        "wfc1": 0.3 * jax.random.normal(ks[6], (s, g, 1, 1), jnp.float32),
        "bfc1": 0.1 * jax.random.normal(ks[7], (s,), jnp.float32),
        "wfc2": 0.3 * jax.random.normal(ks[8], (g, s, 1, 1), jnp.float32),
        "bfc2": 0.1 * jax.random.normal(ks[9], (g,), jnp.float32),
        "w4": 0.3 * jax.random.normal(ks[10], (c, g, 1, 1), jnp.float32),
        "bn4": _bn_init(ks[11], c),
    }


def _fold_block(p, eps):
    def fold(bn):
        scale = bn["gamma"] / jnp.sqrt(bn["var"] + eps)
        return scale, bn["beta"] - bn["mean"] * scale

    s1, o1 = fold(p["bn1"])
    s2, o2 = fold(p["bn2"])
    s4, o4 = fold(p["bn4"])
    g, c = p["w1"].shape[0], p["w1"].shape[1]
    sq = p["wfc1"].shape[0]
    return {
        "w1": s1[:, None] * p["w1"].reshape(g, c),                    # (G, C)
        "b1": o1[:, None],                                            # (G, 1)
        "a1": p["a1"][:, None],                                       # (G, 1)
        "wdw": (s2[:, None] * p["wdw"].reshape(g, 9)).T[:, :, None],  # (9, G, 1)
        "b2": o2[:, None],                                            # (G, 1)
        "a2": p["a2"][:, None],                                       # (G, 1)
        "wfc1": p["wfc1"].reshape(sq, g),                             # (S, G)
        "bfc1": p["bfc1"][:, None],                                   # (S, 1)
        "wfc2": p["wfc2"].reshape(g, sq),                             # (G, S)
        "bfc2": p["bfc2"][:, None],                                   # (G, 1)
        "w4": s4[:, None] * p["w4"].reshape(c, g),                    # (C, G)
        "b4": o4[:, None],                                            # (C, 1)
    }


# ---------------------------------------------------------------------------
# Pure-JAX reference (mirrors the PyTorch module, eval-mode BN).
# ---------------------------------------------------------------------------
def _conv1x1(x, w):
    return jax.lax.conv_general_dilated(
        x, w, (1, 1), "VALID", dimension_numbers=("NCHW", "OIHW", "NCHW"),
        precision=jax.lax.Precision.HIGHEST)


def _bn_eval(x, bn, eps):
    scale = bn["gamma"] / jnp.sqrt(bn["var"] + eps)
    bias = bn["beta"] - bn["mean"] * scale
    return x * scale.reshape(1, -1, 1, 1) + bias.reshape(1, -1, 1, 1)


def _prelu(x, a):
    return jnp.where(x >= 0, x, a.reshape(1, -1, 1, 1) * x)


def _reference(x, blocks, eps):
    for p in blocks:
        g = p["wdw"].shape[0]
        y = _prelu(_bn_eval(_conv1x1(x, p["w1"]), p["bn1"], eps), p["a1"])
        y = jax.lax.conv_general_dilated(
            y, p["wdw"], (1, 1), [(1, 1), (1, 1)],
            dimension_numbers=("NCHW", "OIHW", "NCHW"),
            feature_group_count=g, precision=jax.lax.Precision.HIGHEST)
        y = _prelu(_bn_eval(y, p["bn2"], eps), p["a2"])
        pool = jnp.mean(y, axis=(2, 3), keepdims=True)
        sc = _conv1x1(pool, p["wfc1"]) + p["bfc1"].reshape(1, -1, 1, 1)
        sc = jnp.maximum(sc, 0.0)
        sc = _conv1x1(sc, p["wfc2"]) + p["bfc2"].reshape(1, -1, 1, 1)
        sc = jnp.clip(sc / 6.0 + 0.5, 0.0, 1.0)                 # hardsigmoid
        y = y * sc
        y = _bn_eval(_conv1x1(y, p["w4"]), p["bn4"], eps)
        x = x + y
    return x


if __name__ == "__main__":
    # Residual_Se(c=8, num_block=2, groups=16, kernel=(3,3), stride=(1,1), padding=(1,1))
    N, C, H, W = 2, 8, 16, 16
    GROUPS, NUM_BLOCK, EPS = 16, 2, 1e-5
    SQUEEZE = _make_divisible(GROUPS // 4, 8)        # -> 8

    key = jax.random.PRNGKey(0)
    kx, kp = jax.random.split(key)
    x = jax.random.normal(kx, (N, C, H, W), dtype=jnp.float32)

    raw_blocks = [_init_block(k, C, GROUPS, SQUEEZE)
                  for k in jax.random.split(kp, NUM_BLOCK)]
    folded = [_fold_block(p, EPS) for p in raw_blocks]
    stacked = {k: jnp.stack([f[k] for f in folded]) for k in folded[0]}

    out = residual_se_forward(x, stacked)
    out = jax.block_until_ready(out)

    ref = _reference(x, raw_blocks, EPS)
    assert out.shape == (N, C, H, W), out.shape
    err = float(jnp.max(jnp.abs(out - ref)))
    assert jnp.allclose(out, ref, atol=1e-3, rtol=1e-3), err

    print("KERNEL_OK")
</pallas_src>

<mosaic_0001>
module attributes {stable_mosaic.version = 11 : i64} {
  func.func @_residual_se_kernel(%arg0: i32, %arg1: memref<1x8x256xf32, #tpu.memory_space<vmem>>, %arg2: memref<2x256xf32, #tpu.memory_space<vmem>>, %arg3: memref<2x16x8xf32, #tpu.memory_space<vmem>>, %arg4: memref<2x16x1xf32, #tpu.memory_space<vmem>>, %arg5: memref<2x16x1xf32, #tpu.memory_space<vmem>>, %arg6: memref<2x9x16x1xf32, #tpu.memory_space<vmem>>, %arg7: memref<2x16x1xf32, #tpu.memory_space<vmem>>, %arg8: memref<2x16x1xf32, #tpu.memory_space<vmem>>, %arg9: memref<2x8x16xf32, #tpu.memory_space<vmem>>, %arg10: memref<2x8x1xf32, #tpu.memory_space<vmem>>, %arg11: memref<2x16x8xf32, #tpu.memory_space<vmem>>, %arg12: memref<2x16x1xf32, #tpu.memory_space<vmem>>, %arg13: memref<2x8x16xf32, #tpu.memory_space<vmem>>, %arg14: memref<2x8x1xf32, #tpu.memory_space<vmem>>, %arg15: memref<1x8x256xf32, #tpu.memory_space<vmem>>) attributes {dimension_semantics = [#tpu.dimension_semantics<parallel>], iteration_bounds = array<i64: 2>, scalar_prefetch = 0 : i64, scratch_operands = 0 : i64, tpu.core_type = #tpu.core_type<tc>, window_params = [{transform_indices = @transform_0, window_bounds = array<i64: 1, 8, 256>}, {pipeline_mode = #tpu.pipeline_mode<synchronous>, transform_indices = @transform_1, window_bounds = array<i64: 2, 256>}, {pipeline_mode = #tpu.pipeline_mode<synchronous>, transform_indices = @transform_2, window_bounds = array<i64: 2, 16, 8>}, {pipeline_mode = #tpu.pipeline_mode<synchronous>, transform_indices = @transform_3, window_bounds = array<i64: 2, 16, 1>}, {pipeline_mode = #tpu.pipeline_mode<synchronous>, transform_indices = @transform_4, window_bounds = array<i64: 2, 16, 1>}, {pipeline_mode = #tpu.pipeline_mode<synchronous>, transform_indices = @transform_5, window_bounds = array<i64: 2, 9, 16, 1>}, {pipeline_mode = #tpu.pipeline_mode<synchronous>, transform_indices = @transform_6, window_bounds = array<i64: 2, 16, 1>}, {pipeline_mode = #tpu.pipeline_mode<synchronous>, transform_indices = @transform_7, window_bounds = array<i64: 2, 16, 1>}, {pipeline_mode = #tpu.pipeline_mode<synchronous>, transform_indices = @transform_8, window_bounds = array<i64: 2, 8, 16>}, {pipeline_mode = #tpu.pipeline_mode<synchronous>, transform_indices = @transform_9, window_bounds = array<i64: 2, 8, 1>}, {pipeline_mode = #tpu.pipeline_mode<synchronous>, transform_indices = @transform_10, window_bounds = array<i64: 2, 16, 8>}, {pipeline_mode = #tpu.pipeline_mode<synchronous>, transform_indices = @transform_11, window_bounds = array<i64: 2, 16, 1>}, {pipeline_mode = #tpu.pipeline_mode<synchronous>, transform_indices = @transform_12, window_bounds = array<i64: 2, 8, 16>}, {pipeline_mode = #tpu.pipeline_mode<synchronous>, transform_indices = @transform_13, window_bounds = array<i64: 2, 8, 1>}, {transform_indices = @transform_14, window_bounds = array<i64: 1, 8, 256>}]} {
    %c0 = arith.constant 0 : index
    %c0_0 = arith.constant 0 : index
    %0 = vector.load %arg2[%c0, %c0_0] : memref<2x256xf32, #tpu.memory_space<vmem>>, vector<2x256xf32>
    %1 = vector.extract_strided_slice %0 {offsets = [0, 0], sizes = [1, 256], strides = [1, 1]} : vector<2x256xf32> to vector<1x256xf32>
    %2 = vector.extract_strided_slice %0 {offsets = [1, 0], sizes = [1, 256], strides = [1, 1]} : vector<2x256xf32> to vector<1x256xf32>
    %cst = arith.constant 0.000000e+00 : f32
    %3 = vector.broadcast %cst : f32 to vector<16x128xf32>
    %c0_1 = arith.constant 0 : index
    %c0_2 = arith.constant 0 : index
    %c0_3 = arith.constant 0 : index
    %4 = vector.load %arg1[%c0_1, %c0_2, %c0_3] : memref<1x8x256xf32, #tpu.memory_space<vmem>>, vector<1x8x256xf32>
    %5 = vector.shape_cast %4 : vector<1x8x256xf32> to vector<8x256xf32>
    %c0_4 = arith.constant 0 : index
    %c0_5 = arith.constant 0 : index
    %c0_6 = arith.constant 0 : index
    %6 = vector.load %arg3[%c0_4, %c0_5, %c0_6] : memref<2x16x8xf32, #tpu.memory_space<vmem>>, vector<1x16x8xf32>
    %7 = vector.shape_cast %6 : vector<1x16x8xf32> to vector<16x8xf32>
    %cst_7 = arith.constant dense<0.000000e+00> : vector<16x256xf32>
    %8 = tpu.matmul %7, %5, %cst_7 {dimension_numbers = #tpu.dot_dimension_numbers<[1], [0], [0], [1], [0, 0, 1, 1], [], []>} : vector<16x8xf32>, vector<8x256xf32>, vector<16x256xf32> -> vector<16x256xf32>
    %c0_8 = arith.constant 0 : index
    %c0_9 = arith.constant 0 : index
    %c0_10 = arith.constant 0 : index
    %9 = vector.load %arg4[%c0_8, %c0_9, %c0_10] : memref<2x16x1xf32, #tpu.memory_space<vmem>>, vector<1x16x1xf32>
    %10 = vector.shape_cast %9 : vector<1x16x1xf32> to vector<16x1xf32>
    %11 = vector.broadcast %10 : vector<16x1xf32> to vector<16x256xf32>
    %12 = arith.addf %8, %11 : vector<16x256xf32>
    %cst_11 = arith.constant 0.000000e+00 : f32
    %13 = vector.broadcast %cst_11 : f32 to vector<16x256xf32>
    %14 = arith.cmpf oge, %12, %13 : vector<16x256xf32>
    %c0_12 = arith.constant 0 : index
    %c0_13 = arith.constant 0 : index
    %c0_14 = arith.constant 0 : index
    %15 = vector.load %arg5[%c0_12, %c0_13, %c0_14] : memref<2x16x1xf32, #tpu.memory_space<vmem>>, vector<1x16x1xf32>
    %16 = vector.shape_cast %15 : vector<1x16x1xf32> to vector<16x1xf32>
    %17 = vector.broadcast %16 : vector<16x1xf32> to vector<16x256xf32>
    %18 = arith.mulf %17, %12 : vector<16x256xf32>
    %19 = arith.select %14, %12, %18 : vector<16x256xi1>, vector<16x256xf32>
    %20 = tpu.concatenate %3, %19, %3 in 1 : vector<16x128xf32>, vector<16x256xf32>, vector<16x128xf32> -> vector<16x512xf32>
    %cst_15 = arith.constant 0.000000e+00 : f32
    %21 = vector.broadcast %cst_15 : f32 to vector<16x256xf32>
    %cst_16 = arith.constant 0.000000e+00 : f32
    %22 = vector.broadcast %cst_16 : f32 to vector<16x256xf32>
    %23 = vector.extract_strided_slice %20 {offsets = [0, 111], sizes = [16, 256], strides = [1, 1]} : vector<16x512xf32> to vector<16x256xf32>
    %c0_17 = arith.constant 0 : index
    %c0_18 = arith.constant 0 : index
    %c0_19 = arith.constant 0 : index
    %c0_20 = arith.constant 0 : index
    %24 = vector.load %arg6[%c0_17, %c0_18, %c0_19, %c0_20] : memref<2x9x16x1xf32, #tpu.memory_space<vmem>>, vector<1x1x16x1xf32>
    %25 = vector.shape_cast %24 : vector<1x1x16x1xf32> to vector<16x1xf32>
    %26 = vector.broadcast %25 : vector<16x1xf32> to vector<16x256xf32>
    %27 = arith.mulf %23, %26 : vector<16x256xf32>
    %28 = arith.addf %22, %27 : vector<16x256xf32>
    %29 = vector.extract_strided_slice %20 {offsets = [0, 127], sizes = [16, 256], strides = [1, 1]} : vector<16x512xf32> to vector<16x256xf32>
    %c0_21 = arith.constant 0 : index
    %c3 = arith.constant 3 : index
    %c0_22 = arith.constant 0 : index
    %c0_23 = arith.constant 0 : index
    %30 = vector.load %arg6[%c0_21, %c3, %c0_22, %c0_23] : memref<2x9x16x1xf32, #tpu.memory_space<vmem>>, vector<1x1x16x1xf32>
    %31 = vector.shape_cast %30 : vector<1x1x16x1xf32> to vector<16x1xf32>
    %32 = vector.broadcast %31 : vector<16x1xf32> to vector<16x256xf32>
    %33 = arith.mulf %29, %32 : vector<16x256xf32>
    %34 = arith.addf %28, %33 : vector<16x256xf32>
    %35 = vector.extract_strided_slice %20 {offsets = [0, 143], sizes = [16, 256], strides = [1, 1]} : vector<16x512xf32> to vector<16x256xf32>
    %c0_24 = arith.constant 0 : index
    %c6 = arith.constant 6 : index
    %c0_25 = arith.constant 0 : index
    %c0_26 = arith.constant 0 : index
    %36 = vector.load %arg6[%c0_24, %c6, %c0_25, %c0_26] : memref<2x9x16x1xf32, #tpu.memory_space<vmem>>, vector<1x1x16x1xf32>
    %37 = vector.shape_cast %36 : vector<1x1x16x1xf32> to vector<16x1xf32>
    %38 = vector.broadcast %37 : vector<16x1xf32> to vector<16x256xf32>
    %39 = arith.mulf %35, %38 : vector<16x256xf32>
    %40 = arith.addf %34, %39 : vector<16x256xf32>
    %41 = vector.broadcast %1 : vector<1x256xf32> to vector<16x256xf32>
    %42 = arith.mulf %40, %41 : vector<16x256xf32>
    %43 = arith.addf %21, %42 : vector<16x256xf32>
    %cst_27 = arith.constant 0.000000e+00 : f32
    %44 = vector.broadcast %cst_27 : f32 to vector<16x256xf32>
    %45 = vector.extract_strided_slice %20 {offsets = [0, 112], sizes = [16, 256], strides = [1, 1]} : vector<16x512xf32> to vector<16x256xf32>
    %c0_28 = arith.constant 0 : index
    %c1 = arith.constant 1 : index
    %c0_29 = arith.constant 0 : index
    %c0_30 = arith.constant 0 : index
    %46 = vector.load %arg6[%c0_28, %c1, %c0_29, %c0_30] : memref<2x9x16x1xf32, #tpu.memory_space<vmem>>, vector<1x1x16x1xf32>
    %47 = vector.shape_cast %46 : vector<1x1x16x1xf32> to vector<16x1xf32>
    %48 = vector.broadcast %47 : vector<16x1xf32> to vector<16x256xf32>
    %49 = arith.mulf %45, %48 : vector<16x256xf32>
    %50 = arith.addf %44, %49 : vector<16x256xf32>
    %51 = vector.extract_strided_slice %20 {offsets = [0, 128], sizes = [16, 256], strides = [1, 1]} : vector<16x512xf32> to vector<16x256xf32>
    %c0_31 = arith.constant 0 : index
    %c4 = arith.constant 4 : index
    %c0_32 = arith.constant 0 : index
    %c0_33 = arith.constant 0 : index
    %52 = vector.load %arg6[%c0_31, %c4, %c0_32, %c0_33] : memref<2x9x16x1xf32, #tpu.memory_space<vmem>>, vector<1x1x16x1xf32>
    %53 = vector.shape_cast %52 : vector<1x1x16x1xf32> to vector<16x1xf32>
    %54 = vector.broadcast %53 : vector<16x1xf32> to vector<16x256xf32>
    %55 = arith.mulf %51, %54 : vector<16x256xf32>
    %56 = arith.addf %50, %55 : vector<16x256xf32>
    %57 = vector.extract_strided_slice %20 {offsets = [0, 144], sizes = [16, 256], strides = [1, 1]} : vector<16x512xf32> to vector<16x256xf32>
    %c0_34 = arith.constant 0 : index
    %c7 = arith.constant 7 : index
    %c0_35 = arith.constant 0 : index
    %c0_36 = arith.constant 0 : index
    %58 = vector.load %arg6[%c0_34, %c7, %c0_35, %c0_36] : memref<2x9x16x1xf32, #tpu.memory_space<vmem>>, vector<1x1x16x1xf32>
    %59 = vector.shape_cast %58 : vector<1x1x16x1xf32> to vector<16x1xf32>
    %60 = vector.broadcast %59 : vector<16x1xf32> to vector<16x256xf32>
    %61 = arith.mulf %57, %60 : vector<16x256xf32>
    %62 = arith.addf %56, %61 : vector<16x256xf32>
    %63 = arith.addf %43, %62 : vector<16x256xf32>
    %cst_37 = arith.constant 0.000000e+00 : f32
    %64 = vector.broadcast %cst_37 : f32 to vector<16x256xf32>
    %65 = vector.extract_strided_slice %20 {offsets = [0, 113], sizes = [16, 256], strides = [1, 1]} : vector<16x512xf32> to vector<16x256xf32>
    %c0_38 = arith.constant 0 : index
    %c2 = arith.constant 2 : index
    %c0_39 = arith.constant 0 : index
    %c0_40 = arith.constant 0 : index
    %66 = vector.load %arg6[%c0_38, %c2, %c0_39, %c0_40] : memref<2x9x16x1xf32, #tpu.memory_space<vmem>>, vector<1x1x16x1xf32>
    %67 = vector.shape_cast %66 : vector<1x1x16x1xf32> to vector<16x1xf32>
    %68 = vector.broadcast %67 : vector<16x1xf32> to vector<16x256xf32>
    %69 = arith.mulf %65, %68 : vector<16x256xf32>
    %70 = arith.addf %64, %69 : vector<16x256xf32>
    %71 = vector.extract_strided_slice %20 {offsets = [0, 129], sizes = [16, 256], strides = [1, 1]} : vector<16x512xf32> to vector<16x256xf32>
    %c0_41 = arith.constant 0 : index
    %c5 = arith.constant 5 : index
    %c0_42 = arith.constant 0 : index
    %c0_43 = arith.constant 0 : index
    %72 = vector.load %arg6[%c0_41, %c5, %c0_42, %c0_43] : memref<2x9x16x1xf32, #tpu.memory_space<vmem>>, vector<1x1x16x1xf32>
    %73 = vector.shape_cast %72 : vector<1x1x16x1xf32> to vector<16x1xf32>
    %74 = vector.broadcast %73 : vector<16x1xf32> to vector<16x256xf32>
    %75 = arith.mulf %71, %74 : vector<16x256xf32>
    %76 = arith.addf %70, %75 : vector<16x256xf32>
    %77 = vector.extract_strided_slice %20 {offsets = [0, 145], sizes = [16, 256], strides = [1, 1]} : vector<16x512xf32> to vector<16x256xf32>
    %c0_44 = arith.constant 0 : index
    %c8 = arith.constant 8 : index
    %c0_45 = arith.constant 0 : index
    %c0_46 = arith.constant 0 : index
    %78 = vector.load %arg6[%c0_44, %c8, %c0_45, %c0_46] : memref<2x9x16x1xf32, #tpu.memory_space<vmem>>, vector<1x1x16x1xf32>
    %79 = vector.shape_cast %78 : vector<1x1x16x1xf32> to vector<16x1xf32>
    %80 = vector.broadcast %79 : vector<16x1xf32> to vector<16x256xf32>
    %81 = arith.mulf %77, %80 : vector<16x256xf32>
    %82 = arith.addf %76, %81 : vector<16x256xf32>
    %83 = vector.broadcast %2 : vector<1x256xf32> to vector<16x256xf32>
    %84 = arith.mulf %82, %83 : vector<16x256xf32>
    %85 = arith.addf %63, %84 : vector<16x256xf32>
    %c0_47 = arith.constant 0 : index
    %c0_48 = arith.constant 0 : index
    %c0_49 = arith.constant 0 : index
    %86 = vector.load %arg7[%c0_47, %c0_48, %c0_49] : memref<2x16x1xf32, #tpu.memory_space<vmem>>, vector<1x16x1xf32>
    %87 = vector.shape_cast %86 : vector<1x16x1xf32> to vector<16x1xf32>
    %88 = vector.broadcast %87 : vector<16x1xf32> to vector<16x256xf32>
    %89 = arith.addf %85, %88 : vector<16x256xf32>
    %cst_50 = arith.constant 0.000000e+00 : f32
    %90 = vector.broadcast %cst_50 : f32 to vector<16x256xf32>
    %91 = arith.cmpf oge, %89, %90 : vector<16x256xf32>
    %c0_51 = arith.constant 0 : index
    %c0_52 = arith.constant 0 : index
    %c0_53 = arith.constant 0 : index
    %92 = vector.load %arg8[%c0_51, %c0_52, %c0_53] : memref<2x16x1xf32, #tpu.memory_space<vmem>>, vector<1x16x1xf32>
    %93 = vector.shape_cast %92 : vector<1x16x1xf32> to vector<16x1xf32>
    %94 = vector.broadcast %93 : vector<16x1xf32> to vector<16x256xf32>
    %95 = arith.mulf %94, %89 : vector<16x256xf32>
    %96 = arith.select %91, %89, %95 : vector<16x256xi1>, vector<16x256xf32>
    %cst_54 = arith.constant dense<0.000000e+00> : vector<16xf32>
    %97 = vector.multi_reduction <add>, %96, %cst_54 [1] : vector<16x256xf32> to vector<16xf32>
    %98 = vector.shape_cast %97 : vector<16xf32> to vector<16x1xf32>
    %cst_55 = arith.constant 2.560000e+02 : f32
    %99 = vector.broadcast %cst_55 : f32 to vector<16x1xf32>
    %100 = arith.divf %98, %99 : vector<16x1xf32>
    %101 = vector.shape_cast %100 : vector<16x1xf32> to vector<16x1xf32>
    %102 = vector.broadcast %101 : vector<16x1xf32> to vector<16x256xf32>
    %c0_56 = arith.constant 0 : index
    %c0_57 = arith.constant 0 : index
    %c0_58 = arith.constant 0 : index
    %103 = vector.load %arg9[%c0_56, %c0_57, %c0_58] : memref<2x8x16xf32, #tpu.memory_space<vmem>>, vector<1x8x16xf32>
    %104 = vector.shape_cast %103 : vector<1x8x16xf32> to vector<8x16xf32>
    %cst_59 = arith.constant dense<0.000000e+00> : vector<8x256xf32>
    %105 = tpu.matmul %104, %102, %cst_59 {dimension_numbers = #tpu.dot_dimension_numbers<[1], [0], [0], [1], [0, 0, 1, 1], [], []>} : vector<8x16xf32>, vector<16x256xf32>, vector<8x256xf32> -> vector<8x256xf32>
    %c0_60 = arith.constant 0 : index
    %c0_61 = arith.constant 0 : index
    %c0_62 = arith.constant 0 : index
    %106 = vector.load %arg10[%c0_60, %c0_61, %c0_62] : memref<2x8x1xf32, #tpu.memory_space<vmem>>, vector<1x8x1xf32>
    %107 = vector.shape_cast %106 : vector<1x8x1xf32> to vector<8x1xf32>
    %108 = vector.broadcast %107 : vector<8x1xf32> to vector<8x256xf32>
    %109 = arith.addf %105, %108 : vector<8x256xf32>
    %cst_63 = arith.constant 0.000000e+00 : f32
    %110 = vector.broadcast %cst_63 : f32 to vector<8x256xf32>
    %111 = arith.maximumf %109, %110 : vector<8x256xf32>
    %c0_64 = arith.constant 0 : index
    %c0_65 = arith.constant 0 : index
    %c0_66 = arith.constant 0 : index
    %112 = vector.load %arg11[%c0_64, %c0_65, %c0_66] : memref<2x16x8xf32, #tpu.memory_space<vmem>>, vector<1x16x8xf32>
    %113 = vector.shape_cast %112 : vector<1x16x8xf32> to vector<16x8xf32>
    %cst_67 = arith.constant dense<0.000000e+00> : vector<16x256xf32>
    %114 = tpu.matmul %113, %111, %cst_67 {dimension_numbers = #tpu.dot_dimension_numbers<[1], [0], [0], [1], [0, 0, 1, 1], [], []>} : vector<16x8xf32>, vector<8x256xf32>, vector<16x256xf32> -> vector<16x256xf32>
    %c0_68 = arith.constant 0 : index
    %c0_69 = arith.constant 0 : index
    %c0_70 = arith.constant 0 : index
    %115 = vector.load %arg12[%c0_68, %c0_69, %c0_70] : memref<2x16x1xf32, #tpu.memory_space<vmem>>, vector<1x16x1xf32>
    %116 = vector.shape_cast %115 : vector<1x16x1xf32> to vector<16x1xf32>
    %117 = vector.broadcast %116 : vector<16x1xf32> to vector<16x256xf32>
    %118 = arith.addf %114, %117 : vector<16x256xf32>
    %cst_71 = arith.constant 6.000000e+00 : f32
    %119 = vector.broadcast %cst_71 : f32 to vector<16x256xf32>
    %120 = arith.divf %118, %119 : vector<16x256xf32>
    %cst_72 = arith.constant 5.000000e-01 : f32
    %121 = vector.broadcast %cst_72 : f32 to vector<16x256xf32>
    %122 = arith.addf %120, %121 : vector<16x256xf32>
    %cst_73 = arith.constant 0.000000e+00 : f32
    %cst_74 = arith.constant 1.000000e+00 : f32
    %123 = vector.broadcast %cst_73 : f32 to vector<16x256xf32>
    %124 = arith.maximumf %123, %122 : vector<16x256xf32>
    %125 = vector.broadcast %cst_74 : f32 to vector<16x256xf32>
    %126 = arith.minimumf %125, %124 : vector<16x256xf32>
    %127 = arith.mulf %96, %126 : vector<16x256xf32>
    %c0_75 = arith.constant 0 : index
    %c0_76 = arith.constant 0 : index
    %c0_77 = arith.constant 0 : index
    %128 = vector.load %arg13[%c0_75, %c0_76, %c0_77] : memref<2x8x16xf32, #tpu.memory_space<vmem>>, vector<1x8x16xf32>
    %129 = vector.shape_cast %128 : vector<1x8x16xf32> to vector<8x16xf32>
    %cst_78 = arith.constant dense<0.000000e+00> : vector<8x256xf32>
    %130 = tpu.matmul %129, %127, %cst_78 {dimension_numbers = #tpu.dot_dimension_numbers<[1], [0], [0], [1], [0, 0, 1, 1], [], []>} : vector<8x16xf32>, vector<16x256xf32>, vector<8x256xf32> -> vector<8x256xf32>
    %131 = arith.addf %5, %130 : vector<8x256xf32>
    %c0_79 = arith.constant 0 : index
    %c0_80 = arith.constant 0 : index
    %c0_81 = arith.constant 0 : index
    %132 = vector.load %arg14[%c0_79, %c0_80, %c0_81] : memref<2x8x1xf32, #tpu.memory_space<vmem>>, vector<1x8x1xf32>
    %133 = vector.shape_cast %132 : vector<1x8x1xf32> to vector<8x1xf32>
    %134 = vector.broadcast %133 : vector<8x1xf32> to vector<8x256xf32>
    %135 = arith.addf %131, %134 : vector<8x256xf32>
    %c1_82 = arith.constant 1 : index
    %c0_83 = arith.constant 0 : index
    %c0_84 = arith.constant 0 : index
    %136 = vector.load %arg3[%c1_82, %c0_83, %c0_84] : memref<2x16x8xf32, #tpu.memory_space<vmem>>, vector<1x16x8xf32>
    %137 = vector.shape_cast %136 : vector<1x16x8xf32> to vector<16x8xf32>
    %cst_85 = arith.constant dense<0.000000e+00> : vector<16x256xf32>
    %138 = tpu.matmul %137, %135, %cst_85 {dimension_numbers = #tpu.dot_dimension_numbers<[1], [0], [0], [1], [0, 0, 1, 1], [], []>} : vector<16x8xf32>, vector<8x256xf32>, vector<16x256xf32> -> vector<16x256xf32>
    %c1_86 = arith.constant 1 : index
    %c0_87 = arith.constant 0 : index
    %c0_88 = arith.constant 0 : index
    %139 = vector.load %arg4[%c1_86, %c0_87, %c0_88] : memref<2x16x1xf32, #tpu.memory_space<vmem>>, vector<1x16x1xf32>
    %140 = vector.shape_cast %139 : vector<1x16x1xf32> to vector<16x1xf32>
    %141 = vector.broadcast %140 : vector<16x1xf32> to vector<16x256xf32>
    %142 = arith.addf %138, %141 : vector<16x256xf32>
    %cst_89 = arith.constant 0.000000e+00 : f32
    %143 = vector.broadcast %cst_89 : f32 to vector<16x256xf32>
    %144 = arith.cmpf oge, %142, %143 : vector<16x256xf32>
    %c1_90 = arith.constant 1 : index
    %c0_91 = arith.constant 0 : index
    %c0_92 = arith.constant 0 : index
    %145 = vector.load %arg5[%c1_90, %c0_91, %c0_92] : memref<2x16x1xf32, #tpu.memory_space<vmem>>, vector<1x16x1xf32>
    %146 = vector.shape_cast %145 : vector<1x16x1xf32> to vector<16x1xf32>
    %147 = vector.broadcast %146 : vector<16x1xf32> to vector<16x256xf32>
    %148 = arith.mulf %147, %142 : vector<16x256xf32>
    %149 = arith.select %144, %142, %148 : vector<16x256xi1>, vector<16x256xf32>
    %150 = tpu.concatenate %3, %149, %3 in 1 : vector<16x128xf32>, vector<16x256xf32>, vector<16x128xf32> -> vector<16x512xf32>
    %cst_93 = arith.constant 0.000000e+00 : f32
    %151 = vector.broadcast %cst_93 : f32 to vector<16x256xf32>
    %cst_94 = arith.constant 0.000000e+00 : f32
    %152 = vector.broadcast %cst_94 : f32 to vector<16x256xf32>
    %153 = vector.extract_strided_slice %150 {offsets = [0, 111], sizes = [16, 256], strides = [1, 1]} : vector<16x512xf32> to vector<16x256xf32>
    %c1_95 = arith.constant 1 : index
    %c0_96 = arith.constant 0 : index
    %c0_97 = arith.constant 0 : index
    %c0_98 = arith.constant 0 : index
    %154 = vector.load %arg6[%c1_95, %c0_96, %c0_97, %c0_98] : memref<2x9x16x1xf32, #tpu.memory_space<vmem>>, vector<1x1x16x1xf32>
    %155 = vector.shape_cast %154 : vector<1x1x16x1xf32> to vector<16x1xf32>
    %156 = vector.broadcast %155 : vector<16x1xf32> to vector<16x256xf32>
    %157 = arith.mulf %153, %156 : vector<16x256xf32>
    %158 = arith.addf %152, %157 : vector<16x256xf32>
    %159 = vector.extract_strided_slice %150 {offsets = [0, 127], sizes = [16, 256], strides = [1, 1]} : vector<16x512xf32> to vector<16x256xf32>
    %c1_99 = arith.constant 1 : index
    %c3_100 = arith.constant 3 : index
    %c0_101 = arith.constant 0 : index
    %c0_102 = arith.constant 0 : index
    %160 = vector.load %arg6[%c1_99, %c3_100, %c0_101, %c0_102] : memref<2x9x16x1xf32, #tpu.memory_space<vmem>>, vector<1x1x16x1xf32>
    %161 = vector.shape_cast %160 : vector<1x1x16x1xf32> to vector<16x1xf32>
    %162 = vector.broadcast %161 : vector<16x1xf32> to vector<16x256xf32>
    %163 = arith.mulf %159, %162 : vector<16x256xf32>
    %164 = arith.addf %158, %163 : vector<16x256xf32>
    %165 = vector.extract_strided_slice %150 {offsets = [0, 143], sizes = [16, 256], strides = [1, 1]} : vector<16x512xf32> to vector<16x256xf32>
    %c1_103 = arith.constant 1 : index
    %c6_104 = arith.constant 6 : index
    %c0_105 = arith.constant 0 : index
    %c0_106 = arith.constant 0 : index
    %166 = vector.load %arg6[%c1_103, %c6_104, %c0_105, %c0_106] : memref<2x9x16x1xf32, #tpu.memory_space<vmem>>, vector<1x1x16x1xf32>
    %167 = vector.shape_cast %166 : vector<1x1x16x1xf32> to vector<16x1xf32>
    %168 = vector.broadcast %167 : vector<16x1xf32> to vector<16x256xf32>
    %169 = arith.mulf %165, %168 : vector<16x256xf32>
    %170 = arith.addf %164, %169 : vector<16x256xf32>
    %171 = vector.broadcast %1 : vector<1x256xf32> to vector<16x256xf32>
    %172 = arith.mulf %170, %171 : vector<16x256xf32>
    %173 = arith.addf %151, %172 : vector<16x256xf32>
    %cst_107 = arith.constant 0.000000e+00 : f32
    %174 = vector.broadcast %cst_107 : f32 to vector<16x256xf32>
    %175 = vector.extract_strided_slice %150 {offsets = [0, 112], sizes = [16, 256], strides = [1, 1]} : vector<16x512xf32> to vector<16x256xf32>
    %c1_108 = arith.constant 1 : index
    %c1_109 = arith.constant 1 : index
    %c0_110 = arith.constant 0 : index
    %c0_111 = arith.constant 0 : index
    %176 = vector.load %arg6[%c1_108, %c1_109, %c0_110, %c0_111] : memref<2x9x16x1xf32, #tpu.memory_space<vmem>>, vector<1x1x16x1xf32>
    %177 = vector.shape_cast %176 : vector<1x1x16x1xf32> to vector<16x1xf32>
    %178 = vector.broadcast %177 : vector<16x1xf32> to vector<16x256xf32>
    %179 = arith.mulf %175, %178 : vector<16x256xf32>
    %180 = arith.addf %174, %179 : vector<16x256xf32>
    %181 = vector.extract_strided_slice %150 {offsets = [0, 128], sizes = [16, 256], strides = [1, 1]} : vector<16x512xf32> to vector<16x256xf32>
    %c1_112 = arith.constant 1 : index
    %c4_113 = arith.constant 4 : index
    %c0_114 = arith.constant 0 : index
    %c0_115 = arith.constant 0 : index
    %182 = vector.load %arg6[%c1_112, %c4_113, %c0_114, %c0_115] : memref<2x9x16x1xf32, #tpu.memory_space<vmem>>, vector<1x1x16x1xf32>
    %183 = vector.shape_cast %182 : vector<1x1x16x1xf32> to vector<16x1xf32>
    %184 = vector.broadcast %183 : vector<16x1xf32> to vector<16x256xf32>
    %185 = arith.mulf %181, %184 : vector<16x256xf32>
    %186 = arith.addf %180, %185 : vector<16x256xf32>
    %187 = vector.extract_strided_slice %150 {offsets = [0, 144], sizes = [16, 256], strides = [1, 1]} : vector<16x512xf32> to vector<16x256xf32>
    %c1_116 = arith.constant 1 : index
    %c7_117 = arith.constant 7 : index
    %c0_118 = arith.constant 0 : index
    %c0_119 = arith.constant 0 : index
    %188 = vector.load %arg6[%c1_116, %c7_117, %c0_118, %c0_119] : memref<2x9x16x1xf32, #tpu.memory_space<vmem>>, vector<1x1x16x1xf32>
    %189 = vector.shape_cast %188 : vector<1x1x16x1xf32> to vector<16x1xf32>
    %190 = vector.broadcast %189 : vector<16x1xf32> to vector<16x256xf32>
    %191 = arith.mulf %187, %190 : vector<16x256xf32>
    %192 = arith.addf %186, %191 : vector<16x256xf32>
    %193 = arith.addf %173, %192 : vector<16x256xf32>
    %cst_120 = arith.constant 0.000000e+00 : f32
    %194 = vector.broadcast %cst_120 : f32 to vector<16x256xf32>
    %195 = vector.extract_strided_slice %150 {offsets = [0, 113], sizes = [16, 256], strides = [1, 1]} : vector<16x512xf32> to vector<16x256xf32>
    %c1_121 = arith.constant 1 : index
    %c2_122 = arith.constant 2 : index
    %c0_123 = arith.constant 0 : index
    %c0_124 = arith.constant 0 : index
    %196 = vector.load %arg6[%c1_121, %c2_122, %c0_123, %c0_124] : memref<2x9x16x1xf32, #tpu.memory_space<vmem>>, vector<1x1x16x1xf32>
    %197 = vector.shape_cast %196 : vector<1x1x16x1xf32> to vector<16x1xf32>
    %198 = vector.broadcast %197 : vector<16x1xf32> to vector<16x256xf32>
    %199 = arith.mulf %195, %198 : vector<16x256xf32>
    %200 = arith.addf %194, %199 : vector<16x256xf32>
    %201 = vector.extract_strided_slice %150 {offsets = [0, 129], sizes = [16, 256], strides = [1, 1]} : vector<16x512xf32> to vector<16x256xf32>
    %c1_125 = arith.constant 1 : index
    %c5_126 = arith.constant 5 : index
    %c0_127 = arith.constant 0 : index
    %c0_128 = arith.constant 0 : index
    %202 = vector.load %arg6[%c1_125, %c5_126, %c0_127, %c0_128] : memref<2x9x16x1xf32, #tpu.memory_space<vmem>>, vector<1x1x16x1xf32>
    %203 = vector.shape_cast %202 : vector<1x1x16x1xf32> to vector<16x1xf32>
    %204 = vector.broadcast %203 : vector<16x1xf32> to vector<16x256xf32>
    %205 = arith.mulf %201, %204 : vector<16x256xf32>
    %206 = arith.addf %200, %205 : vector<16x256xf32>
    %207 = vector.extract_strided_slice %150 {offsets = [0, 145], sizes = [16, 256], strides = [1, 1]} : vector<16x512xf32> to vector<16x256xf32>
    %c1_129 = arith.constant 1 : index
    %c8_130 = arith.constant 8 : index
    %c0_131 = arith.constant 0 : index
    %c0_132 = arith.constant 0 : index
    %208 = vector.load %arg6[%c1_129, %c8_130, %c0_131, %c0_132] : memref<2x9x16x1xf32, #tpu.memory_space<vmem>>, vector<1x1x16x1xf32>
    %209 = vector.shape_cast %208 : vector<1x1x16x1xf32> to vector<16x1xf32>
    %210 = vector.broadcast %209 : vector<16x1xf32> to vector<16x256xf32>
    %211 = arith.mulf %207, %210 : vector<16x256xf32>
    %212 = arith.addf %206, %211 : vector<16x256xf32>
    %213 = vector.broadcast %2 : vector<1x256xf32> to vector<16x256xf32>
    %214 = arith.mulf %212, %213 : vector<16x256xf32>
    %215 = arith.addf %193, %214 : vector<16x256xf32>
    %c1_133 = arith.constant 1 : index
    %c0_134 = arith.constant 0 : index
    %c0_135 = arith.constant 0 : index
    %216 = vector.load %arg7[%c1_133, %c0_134, %c0_135] : memref<2x16x1xf32, #tpu.memory_space<vmem>>, vector<1x16x1xf32>
    %217 = vector.shape_cast %216 : vector<1x16x1xf32> to vector<16x1xf32>
    %218 = vector.broadcast %217 : vector<16x1xf32> to vector<16x256xf32>
    %219 = arith.addf %215, %218 : vector<16x256xf32>
    %cst_136 = arith.constant 0.000000e+00 : f32
    %220 = vector.broadcast %cst_136 : f32 to vector<16x256xf32>
    %221 = arith.cmpf oge, %219, %220 : vector<16x256xf32>
    %c1_137 = arith.constant 1 : index
    %c0_138 = arith.constant 0 : index
    %c0_139 = arith.constant 0 : index
    %222 = vector.load %arg8[%c1_137, %c0_138, %c0_139] : memref<2x16x1xf32, #tpu.memory_space<vmem>>, vector<1x16x1xf32>
    %223 = vector.shape_cast %222 : vector<1x16x1xf32> to vector<16x1xf32>
    %224 = vector.broadcast %223 : vector<16x1xf32> to vector<16x256xf32>
    %225 = arith.mulf %224, %219 : vector<16x256xf32>
    %226 = arith.select %221, %219, %225 : vector<16x256xi1>, vector<16x256xf32>
    %cst_140 = arith.constant dense<0.000000e+00> : vector<16xf32>
    %227 = vector.multi_reduction <add>, %226, %cst_140 [1] : vector<16x256xf32> to vector<16xf32>
    %228 = vector.shape_cast %227 : vector<16xf32> to vector<16x1xf32>
    %cst_141 = arith.constant 2.560000e+02 : f32
    %229 = vector.broadcast %cst_141 : f32 to vector<16x1xf32>
    %230 = arith.divf %228, %229 : vector<16x1xf32>
    %231 = vector.shape_cast %230 : vector<16x1xf32> to vector<16x1xf32>
    %232 = vector.broadcast %231 : vector<16x1xf32> to vector<16x256xf32>
    %c1_142 = arith.constant 1 : index
    %c0_143 = arith.constant 0 : index
    %c0_144 = arith.constant 0 : index
    %233 = vector.load %arg9[%c1_142, %c0_143, %c0_144] : memref<2x8x16xf32, #tpu.memory_space<vmem>>, vector<1x8x16xf32>
    %234 = vector.shape_cast %233 : vector<1x8x16xf32> to vector<8x16xf32>
    %cst_145 = arith.constant dense<0.000000e+00> : vector<8x256xf32>
    %235 = tpu.matmul %234, %232, %cst_145 {dimension_numbers = #tpu.dot_dimension_numbers<[1], [0], [0], [1], [0, 0, 1, 1], [], []>} : vector<8x16xf32>, vector<16x256xf32>, vector<8x256xf32> -> vector<8x256xf32>
    %c1_146 = arith.constant 1 : index
    %c0_147 = arith.constant 0 : index
    %c0_148 = arith.constant 0 : index
    %236 = vector.load %arg10[%c1_146, %c0_147, %c0_148] : memref<2x8x1xf32, #tpu.memory_space<vmem>>, vector<1x8x1xf32>
    %237 = vector.shape_cast %236 : vector<1x8x1xf32> to vector<8x1xf32>
    %238 = vector.broadcast %237 : vector<8x1xf32> to vector<8x256xf32>
    %239 = arith.addf %235, %238 : vector<8x256xf32>
    %cst_149 = arith.constant 0.000000e+00 : f32
    %240 = vector.broadcast %cst_149 : f32 to vector<8x256xf32>
    %241 = arith.maximumf %239, %240 : vector<8x256xf32>
    %c1_150 = arith.constant 1 : index
    %c0_151 = arith.constant 0 : index
    %c0_152 = arith.constant 0 : index
    %242 = vector.load %arg11[%c1_150, %c0_151, %c0_152] : memref<2x16x8xf32, #tpu.memory_space<vmem>>, vector<1x16x8xf32>
    %243 = vector.shape_cast %242 : vector<1x16x8xf32> to vector<16x8xf32>
    %cst_153 = arith.constant dense<0.000000e+00> : vector<16x256xf32>
    %244 = tpu.matmul %243, %241, %cst_153 {dimension_numbers = #tpu.dot_dimension_numbers<[1], [0], [0], [1], [0, 0, 1, 1], [], []>} : vector<16x8xf32>, vector<8x256xf32>, vector<16x256xf32> -> vector<16x256xf32>
    %c1_154 = arith.constant 1 : index
    %c0_155 = arith.constant 0 : index
    %c0_156 = arith.constant 0 : index
    %245 = vector.load %arg12[%c1_154, %c0_155, %c0_156] : memref<2x16x1xf32, #tpu.memory_space<vmem>>, vector<1x16x1xf32>
    %246 = vector.shape_cast %245 : vector<1x16x1xf32> to vector<16x1xf32>
    %247 = vector.broadcast %246 : vector<16x1xf32> to vector<16x256xf32>
    %248 = arith.addf %244, %247 : vector<16x256xf32>
    %cst_157 = arith.constant 6.000000e+00 : f32
    %249 = vector.broadcast %cst_157 : f32 to vector<16x256xf32>
    %250 = arith.divf %248, %249 : vector<16x256xf32>
    %cst_158 = arith.constant 5.000000e-01 : f32
    %251 = vector.broadcast %cst_158 : f32 to vector<16x256xf32>
    %252 = arith.addf %250, %251 : vector<16x256xf32>
    %cst_159 = arith.constant 0.000000e+00 : f32
    %cst_160 = arith.constant 1.000000e+00 : f32
    %253 = vector.broadcast %cst_159 : f32 to vector<16x256xf32>
    %254 = arith.maximumf %253, %252 : vector<16x256xf32>
    %255 = vector.broadcast %cst_160 : f32 to vector<16x256xf32>
    %256 = arith.minimumf %255, %254 : vector<16x256xf32>
    %257 = arith.mulf %226, %256 : vector<16x256xf32>
    %c1_161 = arith.constant 1 : index
    %c0_162 = arith.constant 0 : index
    %c0_163 = arith.constant 0 : index
    %258 = vector.load %arg13[%c1_161, %c0_162, %c0_163] : memref<2x8x16xf32, #tpu.memory_space<vmem>>, vector<1x8x16xf32>
    %259 = vector.shape_cast %258 : vector<1x8x16xf32> to vector<8x16xf32>
    %cst_164 = arith.constant dense<0.000000e+00> : vector<8x256xf32>
    %260 = tpu.matmul %259, %257, %cst_164 {dimension_numbers = #tpu.dot_dimension_numbers<[1], [0], [0], [1], [0, 0, 1, 1], [], []>} : vector<8x16xf32>, vector<16x256xf32>, vector<8x256xf32> -> vector<8x256xf32>
    %261 = arith.addf %135, %260 : vector<8x256xf32>
    %c1_165 = arith.constant 1 : index
    %c0_166 = arith.constant 0 : index
    %c0_167 = arith.constant 0 : index
    %262 = vector.load %arg14[%c1_165, %c0_166, %c0_167] : memref<2x8x1xf32, #tpu.memory_space<vmem>>, vector<1x8x1xf32>
    %263 = vector.shape_cast %262 : vector<1x8x1xf32> to vector<8x1xf32>
    %264 = vector.broadcast %263 : vector<8x1xf32> to vector<8x256xf32>
    %265 = arith.addf %261, %264 : vector<8x256xf32>
    %c0_168 = arith.constant 0 : index
    %c0_169 = arith.constant 0 : index
    %c0_170 = arith.constant 0 : index
    %266 = vector.load %arg15[%c0_168, %c0_169, %c0_170] : memref<1x8x256xf32, #tpu.memory_space<vmem>>, vector<1x8x256xf32>
    %267 = vector.shape_cast %266 : vector<1x8x256xf32> to vector<8x256xf32>
    %268 = vector.shape_cast %265 : vector<8x256xf32> to vector<1x8x256xf32>
    tpu.vector_store %arg15[%c0_168, %c0_169, %c0_170], %268 {strides = array<i32>} : memref<1x8x256xf32, #tpu.memory_space<vmem>>, vector<1x8x256xf32>,
    return
  }
  func.func @transform_0(%arg0: i32) -> (i32, i32, i32) {
    %c0_i32 = arith.constant 0 : i32
    %c0_i32_0 = arith.constant 0 : i32
    %c0_i32_1 = arith.constant 0 : i32
    return %arg0, %c0_i32, %c0_i32_0 : i32, i32, i32
  }
  func.func @transform_1(%arg0: i32) -> (i32, i32) {
    %c0_i32 = arith.constant 0 : i32
    %c0_i32_0 = arith.constant 0 : i32
    %c0_i32_1 = arith.constant 0 : i32
    return %c0_i32, %c0_i32_0 : i32, i32
  }
  func.func @transform_2(%arg0: i32) -> (i32, i32, i32) {
    %c0_i32 = arith.constant 0 : i32
    %c0_i32_0 = arith.constant 0 : i32
    %c0_i32_1 = arith.constant 0 : i32
    %c0_i32_2 = arith.constant 0 : i32
    return %c0_i32, %c0_i32_0, %c0_i32_1 : i32, i32, i32
  }
  func.func @transform_3(%arg0: i32) -> (i32, i32, i32) {
    %c0_i32 = arith.constant 0 : i32
    %c0_i32_0 = arith.constant 0 : i32
    %c0_i32_1 = arith.constant 0 : i32
    %c0_i32_2 = arith.constant 0 : i32
    return %c0_i32, %c0_i32_0, %c0_i32_1 : i32, i32, i32
  }
  func.func @transform_4(%arg0: i32) -> (i32, i32, i32) {
    %c0_i32 = arith.constant 0 : i32
    %c0_i32_0 = arith.constant 0 : i32
    %c0_i32_1 = arith.constant 0 : i32
    %c0_i32_2 = arith.constant 0 : i32
    return %c0_i32, %c0_i32_0, %c0_i32_1 : i32, i32, i32
  }
  func.func @transform_5(%arg0: i32) -> (i32, i32, i32, i32) {
    %c0_i32 = arith.constant 0 : i32
    %c0_i32_0 = arith.constant 0 : i32
    %c0_i32_1 = arith.constant 0 : i32
    %c0_i32_2 = arith.constant 0 : i32
    %c0_i32_3 = arith.constant 0 : i32
    return %c0_i32, %c0_i32_0, %c0_i32_1, %c0_i32_2 : i32, i32, i32, i32
  }
  func.func @transform_6(%arg0: i32) -> (i32, i32, i32) {
    %c0_i32 = arith.constant 0 : i32
    %c0_i32_0 = arith.constant 0 : i32
    %c0_i32_1 = arith.constant 0 : i32
    %c0_i32_2 = arith.constant 0 : i32
    return %c0_i32, %c0_i32_0, %c0_i32_1 : i32, i32, i32
  }
  func.func @transform_7(%arg0: i32) -> (i32, i32, i32) {
    %c0_i32 = arith.constant 0 : i32
    %c0_i32_0 = arith.constant 0 : i32
    %c0_i32_1 = arith.constant 0 : i32
    %c0_i32_2 = arith.constant 0 : i32
    return %c0_i32, %c0_i32_0, %c0_i32_1 : i32, i32, i32
  }
  func.func @transform_8(%arg0: i32) -> (i32, i32, i32) {
    %c0_i32 = arith.constant 0 : i32
    %c0_i32_0 = arith.constant 0 : i32
    %c0_i32_1 = arith.constant 0 : i32
    %c0_i32_2 = arith.constant 0 : i32
    return %c0_i32, %c0_i32_0, %c0_i32_1 : i32, i32, i32
  }
  func.func @transform_9(%arg0: i32) -> (i32, i32, i32) {
    %c0_i32 = arith.constant 0 : i32
    %c0_i32_0 = arith.constant 0 : i32
    %c0_i32_1 = arith.constant 0 : i32
    %c0_i32_2 = arith.constant 0 : i32
    return %c0_i32, %c0_i32_0, %c0_i32_1 : i32, i32, i32
  }
  func.func @transform_10(%arg0: i32) -> (i32, i32, i32) {
    %c0_i32 = arith.constant 0 : i32
    %c0_i32_0 = arith.constant 0 : i32
    %c0_i32_1 = arith.constant 0 : i32
    %c0_i32_2 = arith.constant 0 : i32
    return %c0_i32, %c0_i32_0, %c0_i32_1 : i32, i32, i32
  }
  func.func @transform_11(%arg0: i32) -> (i32, i32, i32) {
    %c0_i32 = arith.constant 0 : i32
    %c0_i32_0 = arith.constant 0 : i32
    %c0_i32_1 = arith.constant 0 : i32
    %c0_i32_2 = arith.constant 0 : i32
    return %c0_i32, %c0_i32_0, %c0_i32_1 : i32, i32, i32
  }
  func.func @transform_12(%arg0: i32) -> (i32, i32, i32) {
    %c0_i32 = arith.constant 0 : i32
    %c0_i32_0 = arith.constant 0 : i32
    %c0_i32_1 = arith.constant 0 : i32
    %c0_i32_2 = arith.constant 0 : i32
    return %c0_i32, %c0_i32_0, %c0_i32_1 : i32, i32, i32
  }
  func.func @transform_13(%arg0: i32) -> (i32, i32, i32) {
    %c0_i32 = arith.constant 0 : i32
    %c0_i32_0 = arith.constant 0 : i32
    %c0_i32_1 = arith.constant 0 : i32
    %c0_i32_2 = arith.constant 0 : i32
    return %c0_i32, %c0_i32_0, %c0_i32_1 : i32, i32, i32
  }
  func.func @transform_14(%arg0: i32) -> (i32, i32, i32) {
    %c0_i32 = arith.constant 0 : i32
    %c0_i32_0 = arith.constant 0 : i32
    %c0_i32_1 = arith.constant 0 : i32
    return %arg0, %c0_i32, %c0_i32_0 : i32, i32, i32
  }
}

</mosaic_0001>

<bundles_post_ra>
// kernel: tpu_custom_call.1
= control target key start
LH: loop header
LB: loop body
LE: loop exit
PB: predicated region body
PF: predicated region fallthrough
CT: control target
= control target key end

     0   :  { %s3772_s0 = inlined_call_operand.vmem [shape: f32[2,8,256], index: 0, kind: input, shape index: {}]   ;;  %s3773_s1 = inlined_call_operand.vmem [shape: f32[2,256], index: 1, kind: input, shape index: {}]   ;;  %s3774_s2 = inlined_call_operand.vmem [shape: f32[2,16,8], index: 2, kind: input, shape index: {}]   ;;  %s3775_s3 = inlined_call_operand.vmem [shape: f32[2,16,1], index: 3, kind: input, shape index: {}]   ;;  %s3776_s4 = inlined_call_operand.vmem [shape: f32[2,16,1], index: 4, kind: input, shape index: {}]   ;;  %s3777_s5 = inlined_call_operand.vmem [shape: f32[2,9,16,1], index: 5, kind: input, shape index: {}]   ;;  %s3778_s6 = inlined_call_operand.vmem [shape: f32[2,16,1], index: 6, kind: input, shape index: {}]   ;;  %s3779_s7 = inlined_call_operand.vmem [shape: f32[2,16,1], index: 7, kind: input, shape index: {}]   ;;  %s3780_s8 = inlined_call_operand.vmem [shape: f32[2,8,16], index: 8, kind: input, shape index: {}]   ;;  %s3781_s9 = inlined_call_operand.vmem [shape: f32[2,8,1], index: 9, kind: input, shape index: {}]   ;;  %s3782_s10 = inlined_call_operand.vmem [shape: f32[2,16,8], index: 10, kind: input, shape index: {}]   ;;  %s3783_s11 = inlined_call_operand.vmem [shape: f32[2,16,1], index: 11, kind: input, shape index: {}]   ;;  %s3784_s12 = inlined_call_operand.vmem [shape: f32[2,8,16], index: 12, kind: input, shape index: {}]   ;;  %s3785_s13 = inlined_call_operand.vmem [shape: f32[2,8,1], index: 13, kind: input, shape index: {}]   ;;  %s3786_s14 = inlined_call_operand.hbm [shape: f32[2,8,256], index: 14, kind: output, shape index: {}]  }
   0x1   :  { %3803 = sst [smem:[#allocation9_spill]] %s3772_s0 }
   0x2   :  { %19 = vsyncpa [#allocation3], 0 }
   0x3   :  { %21 = vsyncpa [#allocation3 + $0x1], 0  ;;  %s2910_s29 = smov 0   ;;  %s2912_s30 = smov 0  }
   0x4   :  { %s2914_s15 = smov 0   ;;  %s2916_s16 = smov 0  }
   0x5 LB: > { %3804 = sst [smem:[#allocation5_spill]] %s2819_s15  ;;  %s2931_s17 = sadd.s32 4294967295, %s2823_s16   ;;  %s2823_s16 = sphi %s2916_s16, %s3818_s16   ;;  %s2819_s15 = sphi %s2914_s15, %s3820_s15   ;;  %s2815_s30 = sphi %s2912_s30, %s3822_s30   ;;  %s2811_s29 = sphi %s2910_s29, %s3821_s29  }
   0x6   : > { %s2633_s18 = sadd.s32 4294967294, %s2823_s16   ;;  %s2935_s19 = sadd.s32 1, %s2823_s16  }
   0x7   : > { %3805 = sst [smem:[#allocation6_spill]] %s2935_s19  ;;  %s333_s20 = sadd.s32 1, %s2819_s15 }
   0x8   : > { %s330_s21 = ssub.s32 %s2823_s16, %s2935_s19  ;;  %p343_p0 = scmp.ne.s32.totalorder %s2819_s15, %s2815_s30 }
   0x9   : > { %p331_p1 = scmp.eq.s32.totalorder %s330_s21, 0  ;;  %p344_p2 = scmp.eq.s32.totalorder %s2931_s17, 1 }
   0xa   : > { %p349_p3 = scmp.ne.s32.totalorder %s2815_s30, %s2811_s29  ;;  %p350_p4 = scmp.eq.s32.totalorder %s2633_s18, 1 }
   0xb   : > { %s2946_s22 = scalar_select %p331_p1, %s2819_s15, %s333_s20  }
   0xc   : > { %p2948_p5 = por %p344_p2, %p343_p0  ;;  %p2952_p6 = por %p350_p4, %p349_p3 }
   0xd   : > { %3806 = sst [smem:[#allocation7_spill]] %s2946_s22  ;;  %p2636_p7 = scmp.ge.s32.totalorder %s2823_s16, 1 }
   0xe   : > { %s3808_s24 = scalar_select %p2952_p6, 1, 0 }
   0xf   : > { %p415_p8 = scmp.lt.s32.totalorder %s2823_s16, 3 }
  0x10   : > { %3809 = sst [smem:[#allocation8_spill]] %s3808_s24 }
  0x11   : > { %p416_p9 = pnand %p2636_p7, %p415_p8 }
  0x12   : > { %p461_p10 = scmp.lt.s32.totalorder (!%p416_p9), %s2931_s17, 1  ;;  %s3810_s0 = sld [smem:[#allocation9_spill]] (!%p416_p9) }
  0x13   : > { %419 = sbr.rel (%p416_p9) target bundleno = 3278 (0xcce), region = 76  ;;  %s3799_s20 = smov (!%p416_p9), 112  }
  0x14   : > { %s3795_s24 = smov (!%p416_p9), 96   ;;  %s2829_s26 = smov (!%p416_p9), 113  }
  0x15   : > { %s3793_s19 = smov (!%p416_p9), 127   ;;  %s3791_s21 = smov (!%p416_p9), 126  }
  0x16   : > { %s3801_s28 = smov (!%p416_p9), 17   ;;  %s3816_s15 = smov (!%p416_p9), 111  }
  0x18   : > { %v2825_v0 = vmov 0.0   ;;  %v2826_v1 = vmov 0   ;;  %v572_v2 = vld [vmem:[%s3776_s4 + $0x8] sm:$0xff]  ;;  %s462_s18 = scalar_select %p461_p10, %s2931_s17, 1  ;;  %v571_v4 = vld [vmem:[%s3776_s4] sm:$0xff]  ;;  %vm483_vm0 = vcmask 64512  }
  0x19   : > { %554 = vmatprep.mubr.f32.mxu0 %v2825_v0  ;;  %2760 = vset.pattern.permute.xlu1 %v2826_v1  ;;  %v472_v3 = vld [vmem:[%s3775_s3 + $0x8] sm:$0xff]  ;;  %v471_v5 = vld [vmem:[%s3775_s3] sm:$0xff]  ;;  %v2655_v9 = vld [vmem:[%s3777_s5 + $0x58] sm:$0xff]  ;;  %vm652_vm5 = vcmask 916480   ;;  %vm706_vm6 = vcmask 785408   ;;  %vm1076_vm7 = vcmask 924672  }
  0x1a   : > { %2759 = vset.pattern.permute.xlu0 %v2826_v1  ;;  %580 = vperm.xlu1 %2760, %v572_v2   ;;  %s2709_s22 = sshll.u32 %s462_s18, 4  ;;  %v469_v8 = vld [vmem:[%s3774_s2] sm:$0xff]  ;;  %v2649_v10 = vld [vmem:[%s3777_s5 + $0x48] sm:$0xff]  ;;  %v2651_v12 = vld [vmem:[%s3777_s5 + $0x78] sm:$0xff]  ;;  %vm904_vm8 = vcmask 1039360   ;;  %vm748_vm9 = vcmask 908288  }
  0x1b   : > { %480 = vperm.xlu0 %2759, %v472_v3   ;;  %1281 = vmatprep.mubr.f32.mxu1 %v2825_v0  ;;  %s2977_s27 = scalar_lea.vmem %s3810_s0, %s2709_s22  ;;  %v470_v11 = vld [vmem:[%s3774_s2 + $0x8] sm:$0xff]  ;;  %v2648_v13 = vld [vmem:[%s3777_s5 + $0x40] sm:$0xff]  ;;  %v2654_v15 = vld [vmem:[%s3777_s5 + $0x50] sm:$0xff]  ;;  %v724_v3 = vlaneseq  ;;  %s3797_s22 = smov 111   ;;  %vm1105_vm10 = vcmask 1031168  }
  0x1c   : > { %v468_v6 = vld [vmem:[%s2977_s27 + $0x8] sm:$0xff]  ;;  %v467_v7 = vld [vmem:[%s2977_s27] sm:$0xff]  ;;  %v2650_v17 = vld [vmem:[%s3777_s5 + $0x70] sm:$0xff] }
  0x1d   : > { %520 = vmatprep.subr.mxu0 %v468_v6  ;;  %v2657_v14 = vld [vmem:[%s3777_s5 + $0x88] sm:$0xff]  ;;  %v2656_v16 = vld [vmem:[%s3777_s5 + $0x80] sm:$0xff]  ;;  %v2642_v18 = vld [vmem:[%s3777_s5 + $0x30] sm:$0xff] }
  0x1e   : > { %575 = vperm.xlu1 %2760, %v571_v4   ;;  %521 = vmatpush1.msra.mxu0 %v467_v7  ;;  %v2643_v19 = vld [vmem:[%s3777_s5 + $0x38] sm:$0xff]  ;;  %v2645_v21 = vld [vmem:[%s3777_s5 + $0x68] sm:$0xff]  ;;  %v2644_v22 = vld [vmem:[%s3777_s5 + $0x60] sm:$0xff]  ;;  %v725_v7 = vshrl.u32 %v724_v3, 7 }
  0x1f   : > { %475 = vperm.xlu0 %2759, %v471_v5   ;;  %2640 = vmatmul.mubr.msk.f32.vlgmr.msra.gmra.mxu0 %vm483_vm0, %v469_v8  ;;  %v2647_v20 = vld [vmem:[%s3777_s5 + $0x18] sm:$0xff]  ;;  %v2653_v23 = vld [vmem:[%s3777_s5 + $0x28] sm:$0xff]  ;;  %v2652_v24 = vld [vmem:[%s3777_s5 + $0x20] sm:$0xff] }
  0x20   : > { %560 = vmatprep.mubr.f32.mxu0 %v2825_v0  ;;  %v2646_v25 = vld [vmem:[%s3777_s5 + $0x10] sm:$0xff] }
  0x22   : > { %956 = vperm.xlu1 %2760, %v2655_v9  }
  0x23   : > { %800 = vperm.xlu0 %2759, %v2649_v10   ;;  %2641 = vmatmul.mubr.msk.f32.gmra.mxu0 %vm483_vm0, %v470_v11  ;;  %v1054_v11 = vsub.s32 1, %v725_v7 }
  0x24   : > { %1524 = vmatprep.mubr.f32.mxu0 %v2825_v0 }
  0x26   : > { %843 = vperm.xlu1 %2760, %v2651_v12   ;;  %v1058_v12 = vsub.s32 3, %v725_v7 }
  0x27   : > { %795 = vperm.xlu0 %2759, %v2648_v13   ;;  %v466_v13 = vld [vmem:[%s3773_s1] sm:$0xf] }
  0x2a   : > { %1009 = vperm.xlu1 %2760, %v2657_v14  }
  0x2b   : > { %951 = vperm.xlu0 %2759, %v2654_v15  }
  0x2e   : > { %1004 = vperm.xlu1 %2760, %v2656_v16   ;;  %v1055_v16 = vrot.slane %v466_v13, %v1054_v11 }
  0x2f   : > { %838 = vperm.xlu0 %2759, %v2650_v17   ;;  %v1059_v17 = vrot.slane %v466_v13, %v1058_v12 }
  0x32   : > { %620 = vperm.xlu1 %2760, %v2642_v18  }
  0x33   : > { %625 = vperm.xlu0 %2759, %v2643_v19  }
  0x36   : > { %775 = vperm.xlu1 %2760, %v2647_v20   ;;  %v1065_v20 = vrot.slane %v1055_v16, %v1054_v11 }
  0x37   : > { %679 = vperm.xlu0 %2759, %v2645_v21   ;;  %v1069_v21 = vrot.slane %v1059_v17, %v1054_v11 }
  0x3a   : > { %674 = vperm.xlu1 %2760, %v2644_v22   ;;  %v592_v22 = vld [vmem:[%s3777_s5 + $0x8] sm:$0xff] }
  0x3b   : > { %931 = vperm.xlu0 %2759, %v2653_v23   ;;  %v591_v23 = vld [vmem:[%s3777_s5] sm:$0xff] }
  0x3e   : > { %926 = vperm.xlu1 %2760, %v2652_v24  }
  0x3f   : > { %770 = vperm.xlu0 %2759, %v2646_v25  }
  0x95   : > { %v581_v26 = vpop.permute.xlu1 %580 }
  0x96   : > { %v481_v27 = vpop.permute.xlu0 %480 }
  0x99   : > { %v576_v28 = vpop.permute.xlu1 %575 }
  0x9a   : > { %v476_v29 = vpop.permute.xlu0 %475 }
  0x9d   : > { %v3039_v30 = vpop.permute.xlu1 %956 }
  0x9e   : > { %v3041_v31 = vpop.permute.xlu0 %800  ;;  %v964_v32 = vmul.f32 0.0, %v3039_v30 }
  0xa0   : > { %981 = vrot.lane.b32.xlu0 %v964_v32, %s3799_s20 }
  0xa1   : > { %v3045_v33 = vpop.permute.xlu1 %843 }
  0xa2   : > { %v796_v34 = vpop.permute.xlu0 %795  ;;  %v851_v35 = vmul.f32 0.0, %v3045_v33 }
  0xa4   : > { %868 = vrot.lane.b32.xlu1 %v851_v35, %s3795_s24  ;;  %v730_v35 = vsub.s32 2, %v725_v7 }
  0xa5   : > { %v3049_v36 = vpop.permute.xlu1 %1009 }
  0xa6   : > { %v952_v37 = vpop.permute.xlu0 %951  ;;  %v1017_v38 = vmul.f32 0.0, %v3049_v36 }
  0xa7   : > { %v961_v39 = vmul.f32 0.0, %v952_v37 }
  0xa8   : > { %1034 = vrot.lane.b32.xlu1 %v1017_v38, %s3795_s24 }
  0xa9   : > { %v1005_v40 = vpop.permute.xlu1 %1004  ;;  %975 = vrot.lane.b32.xlu0 %v961_v39, %s3799_s20  ;;  %v731_v39 = vrot.slane %v466_v13, %v730_v35 }
  0xaa   : > { %v839_v41 = vpop.permute.xlu0 %838  ;;  %v1014_v42 = vmul.f32 0.0, %v1005_v40 }
  0xab   : > { %v848_v43 = vmul.f32 0.0, %v839_v41 }
  0xac   : > { %1028 = vrot.lane.b32.xlu1 %v1014_v42, %s3795_s24 }
  0xad   : > { %862 = vrot.lane.b32.xlu0 %v848_v43, %s3795_s24  ;;  %v621_v24 = vpop.permute.xlu1 %620 }
  0xae   : > { %v626_v25 = vpop.permute.xlu0 %625 }
  0xdf   : > { %v556_v44 = vpop.f32.mrf.mxu0 }
  0xe0   : > { %v557_v45 = vadd.f32 %v556_v44, %v476_v29 }
  0xe1   : > { %v558_v46 = vpop.f32.mrf.mxu0 }
  0xe2   : > { %vm567_vm1 = vcmp.ge.f32.partialorder %v557_v45, 0.0  ;;  %v583_v47 = vmul.f32 %v576_v28, %v557_v45  ;;  %v559_v48 = vadd.f32 %v558_v46, %v476_v29  ;;  %v1122_v46 = vld [vmem:[%s3778_s6] sm:$0xff] }
  0xe3   : > { %v562_v53 = vpop.f32.mrf.mxu0 }
  0xe4   : > { %v3056_v49 = vsel %vm567_vm1, %v557_v45, %v583_v47  ;;  %v584_v52 = vmul.f32 %v576_v28, %v559_v48  ;;  %vm568_vm2 = vcmp.ge.f32.partialorder %v559_v48, 0.0  ;;  %v563_v57 = vadd.f32 %v562_v53, %v481_v27  ;;  %v1123_v45 = vld [vmem:[%s3778_s6 + $0x8] sm:$0xff] }
  0xe5   : > { %v959_v50 = vmul.f32 %v952_v37, %v3056_v49  ;;  %v803_v51 = vmul.f32 %v796_v34, %v3056_v49  ;;  %v846_v54 = vmul.f32 %v839_v41, %v3056_v49  ;;  %v1012_v55 = vmul.f32 %v1005_v40, %v3056_v49  ;;  %v564_v61 = vpop.f32.mrf.mxu0  ;;  %v1147_v47 = vld [vmem:[%s3779_s7 + $0x8] sm:$0xff] }
  0xe6   : > { %v3064_v56 = vsel %vm568_vm2, %v559_v48, %v584_v52  ;;  %v585_v60 = vmul.f32 %v581_v26, %v563_v57  ;;  %vm569_vm3 = vcmp.ge.f32.partialorder %v563_v57, 0.0  ;;  %v565_v2 = vadd.f32 %v564_v61, %v481_v27 }
  0xe7   : > { %971 = vrot.lane.b32.xlu0 %v959_v50, %s3799_s20  ;;  %811 = vrot.lane.b32.xlu1 %v803_v51, %s3799_s20  ;;  %v804_v58 = vmul.f32 %v796_v34, %v3064_v56  ;;  %v960_v59 = vmul.f32 %v952_v37, %v3064_v56  ;;  %v1013_v62 = vmul.f32 %v1005_v40, %v3064_v56  ;;  %v628_v28 = vmul.f32 0.0, %v621_v24 }
  0xe8   : > { %v847_v63 = vmul.f32 %v839_v41, %v3064_v56  ;;  %v3074_v1 = vsel %vm569_vm3, %v563_v57, %v585_v60  ;;  %v586_v6 = vmul.f32 %v581_v26, %v565_v2  ;;  %vm570_vm4 = vcmp.ge.f32.partialorder %v565_v2, 0.0 }
  0xe9   : > { %v805_v4 = vmul.f32 %v3041_v31, %v3074_v1  ;;  %v849_v5 = vmul.f32 %v3045_v33, %v3074_v1  ;;  %v962_v8 = vmul.f32 %v3039_v30, %v3074_v1  ;;  %v1015_v9 = vmul.f32 %v3049_v36, %v3074_v1 }
  0xea   : > { %v3088_v10 = vsel %vm570_vm4, %v565_v2, %v586_v6  ;;  %v631_v26 = vmul.f32 0.0, %v626_v25  ;;  %v632_v27 = vmul.f32 %v626_v25, %v3074_v1  ;;  %v629_v29 = vmul.f32 %v621_v24, %v3056_v49 }
  0xeb   : > { %858 = vrot.lane.b32.xlu0 %v846_v54, %s3795_s24  ;;  %1024 = vrot.lane.b32.xlu1 %v1012_v55, %s3795_s24  ;;  %v850_v14 = vmul.f32 %v3045_v33, %v3088_v10  ;;  %v806_v15 = vmul.f32 %v3041_v31, %v3088_v10  ;;  %v1016_v18 = vmul.f32 %v3049_v36, %v3088_v10  ;;  %v680_v31 = vpop.permute.xlu0 %679  ;;  %v726_v34 = vsub.s32 0, %v725_v7 }
  0xec   : > { %v963_v19 = vmul.f32 %v3039_v30, %v3088_v10  ;;  %v3117_v30 = vpop.permute.xlu1 %775  ;;  %v630_v32 = vmul.f32 %v621_v24, %v3064_v56  ;;  %v685_v33 = vmul.f32 %v680_v31, %v3074_v1  ;;  %v687_v38 = vmul.f32 0.0, %v680_v31 }
  0xed   : > { %v727_v40 = vrot.slane %v466_v13, %v726_v34  ;;  %v741_v43 = vrot.slane %v731_v39, %v726_v34  ;;  %v633_v48 = vmul.f32 %v626_v25, %v3088_v10  ;;  %v686_v50 = vmul.f32 %v680_v31, %v3088_v10 }
  0xee   : > { %vm1188_vm2 = vcmask 138240   ;;  %vm1213_vm3 = vcmask 130048  }
  0xef   : > { %813 = vrot.lane.b32.xlu0 %v804_v58, %s3799_s20  ;;  %973 = vrot.lane.b32.xlu1 %v960_v59, %s3799_s20  ;;  %v737_v44 = vrot.slane %v727_v40, %v726_v34  ;;  %v3146_v51 = vpop.permute.xlu0 %931 }
  0xf0   : > { %v675_v36 = vpop.permute.xlu1 %674  ;;  %v937_v35 = vmul.f32 0.0, %v3146_v51 }
  0xf1   : > { %v682_v37 = vmul.f32 %v675_v36, %v3056_v49  ;;  %v684_v41 = vmul.f32 0.0, %v675_v36  ;;  %v683_v42 = vmul.f32 %v675_v36, %v3064_v56 }
  0xf3   : > { %1026 = vrot.lane.b32.xlu0 %v1013_v62, %s3795_s24  ;;  %860 = vrot.lane.b32.xlu1 %v847_v63, %s3795_s24  ;;  %v771_v53 = vpop.permute.xlu0 %770 }
  0xf4   : > { %v3148_v52 = vpop.permute.xlu1 %926  ;;  %v778_v63 = vmul.f32 0.0, %v771_v53  ;;  %v779_v11 = vmul.f32 %v771_v53, %v3056_v49 }
  0xf7   : > { %815 = vrot.lane.b32.xlu0 %v805_v4, %s3799_s20  ;;  %864 = vrot.lane.b32.xlu1 %v849_v5, %s3795_s24 }
  0xfb   : > { %977 = vrot.lane.b32.xlu0 %v962_v8, %s3799_s20  ;;  %1030 = vrot.lane.b32.xlu1 %v1015_v9, %s3795_s24  ;;  %v780_v9 = vmul.f32 %v771_v53, %v3064_v56 }
  0xff   : > { %866 = vrot.lane.b32.xlu0 %v850_v14, %s3795_s24  ;;  %817 = vrot.lane.b32.xlu1 %v806_v15, %s3799_s20 }
 0x103   : > { %1032 = vrot.lane.b32.xlu0 %v1016_v18, %s3795_s24  ;;  %979 = vrot.lane.b32.xlu1 %v963_v19, %s3799_s20 }
 0x107   : > { %1072 = vrot.lane.b32.xlu0 %v1065_v20, %s2829_s26  ;;  %1074 = vrot.lane.b32.xlu1 %v1069_v21, %s2829_s26 }
 0x10b   : > { %600 = vperm.xlu0 %2759, %v592_v22   ;;  %595 = vperm.xlu1 %2760, %v591_v23  }
 0x10f   : > { %646 = vrot.lane.b32.xlu0 %v631_v26, %s3799_s20  ;;  %648 = vrot.lane.b32.xlu1 %v632_v27, %s3799_s20  ;;  %v934_v26 = vmul.f32 0.0, %v3148_v52 }
 0x112   : > { %v982_v55 = vpop.permute.xlu0 %981 }
 0x113   : > { %640 = vrot.lane.b32.xlu1 %v628_v28, %s3799_s20  ;;  %642 = vrot.lane.b32.xlu0 %v629_v29, %s3799_s20  ;;  %v935_v28 = vmul.f32 %v3148_v52, %v3056_v49 }
 0x116   : > { %v3150_v54 = vpop.permute.xlu1 %868 }
 0x117   : > { %644 = vrot.lane.b32.xlu1 %v630_v32, %s3799_s20  ;;  %700 = vrot.lane.b32.xlu0 %v685_v33, %s3795_s24 }
 0x11a   : > { %v3152_v57 = vpop.permute.xlu1 %1034 }
 0x11b   : > { %694 = vrot.lane.b32.xlu1 %v682_v37, %s3795_s24  ;;  %704 = vrot.lane.b32.xlu0 %v687_v38, %s3795_s24  ;;  %v3154_v58 = vpop.permute.xlu0 %975  ;;  %v781_v37 = vmul.f32 0.0, %v3117_v30 }
 0x11e   : > { %v3156_v59 = vpop.permute.xlu1 %1028 }
 0x11f   : > { %698 = vrot.lane.b32.xlu1 %v684_v41, %s3795_s24  ;;  %696 = vrot.lane.b32.xlu0 %v683_v42, %s3795_s24  ;;  %v863_v60 = vpop.permute.xlu0 %862 }
 0x123   : > { %746 = vrot.lane.b32.xlu1 %v741_v43, %s3797_s22  ;;  %744 = vrot.lane.b32.xlu0 %v737_v44, %s3797_s22 }
 0x127   : > { %1131 = vperm.xlu1 %2760, %v1123_v45   ;;  %1126 = vperm.xlu0 %2759, %v1122_v46  }
 0x12b   : > { %1155 = vperm.xlu1 %2760, %v1147_v47   ;;  %650 = vrot.lane.b32.xlu0 %v633_v48, %s3799_s20  ;;  %v783_v47 = vmul.f32 %v3117_v30, %v3088_v10  ;;  %s2710_s20 = sshll.u32 %s2931_s17, 8  ;;  %s2834_s17 = smov [#allocation2]  }
 0x12c   : > { %s2572_s25 = scalar_lea.hbm %s3786_s14, %s2710_s20 }
 0x12f   : > { %702 = vrot.lane.b32.xlu1 %v686_v50, %s3795_s24  ;;  %v938_v50 = vmul.f32 %v3146_v51, %v3074_v1  ;;  %s3812_s24 = smov 96  }
 0x159   : > { %v972_v61 = vpop.permute.xlu0 %971  ;;  %v812_v62 = vpop.permute.xlu1 %811 }
 0x15a   : > { %v827_v2 = vadd.f32 %v812_v62, %v778_v63  ;;  %v993_v32 = vadd.f32 %v972_v61, %v934_v26 }
 0x15d   : > { %v859_v3 = vpop.permute.xlu0 %858  ;;  %v1025_v4 = vpop.permute.xlu1 %1024 }
 0x15e   : > { %v880_v5 = vadd.f32 %v859_v3, %v827_v2  ;;  %v1046_v36 = vadd.f32 %v1025_v4, %v993_v32 }
 0x160   : > { %892 = vrot.lane.b32.xlu0 %v880_v5, %s3793_s19 }
 0x161   : > { %v814_v6 = vpop.permute.xlu0 %813  ;;  %v3159_v7 = vpop.permute.xlu1 %973 }
 0x162   : > { %v819_v8 = vsel %vm652_vm5, %v812_v62, %v814_v6  ;;  %v829_v13 = vadd.f32 %v814_v6, %v780_v9  ;;  %v983_v27 = vsel %vm652_vm5, %v972_v61, %v3159_v7  ;;  %v782_v61 = vmul.f32 %v3117_v30, %v3074_v1 }
 0x163   : > { %v828_v12 = vadd.f32 %v819_v8, %v779_v11  ;;  %v994_v34 = vadd.f32 %v983_v27, %v935_v28  ;;  %v939_v62 = vmul.f32 %v3146_v51, %v3088_v10 }
 0x165   : > { %v3164_v14 = vpop.permute.xlu0 %1026  ;;  %v861_v15 = vpop.permute.xlu1 %860 }
 0x166   : > { %v870_v16 = vsel %vm706_vm6, %v859_v3, %v861_v15  ;;  %v871_v17 = vsel %vm706_vm6, %v861_v15, %v863_v60  ;;  %v1036_v33 = vsel %vm706_vm6, %v1025_v4, %v3164_v14  ;;  %v936_v15 = vmul.f32 %v3148_v52, %v3064_v56 }
 0x167   : > { %v881_v18 = vadd.f32 %v870_v16, %v828_v12  ;;  %v882_v19 = vadd.f32 %v871_v17, %v829_v13  ;;  %v1047_v38 = vadd.f32 %v1036_v33, %v994_v34  ;;  %v1037_v16 = vsel %vm706_vm6, %v3164_v14, %v3156_v59 }
 0x169   : > { %v816_v20 = vpop.permute.xlu0 %815  ;;  %v865_v21 = vpop.permute.xlu1 %864  ;;  %894 = vrot.lane.b32.xlu1 %v881_v18, %s3793_s19  ;;  %896 = vrot.lane.b32.xlu0 %v882_v19, %s3793_s19 }
 0x16a   : > { %v830_v42 = vadd.f32 %v816_v20, %v781_v37 }
 0x16c   : > { %v883_v63 = vadd.f32 %v865_v21, %v830_v42 }
 0x16d   : > { %v978_v22 = vpop.permute.xlu0 %977  ;;  %v1031_v23 = vpop.permute.xlu1 %1030 }
 0x16e   : > { %v996_v39 = vadd.f32 %v978_v22, %v937_v35 }
 0x170   : > { %v1049_v60 = vadd.f32 %v1031_v23, %v996_v39 }
 0x171   : > { %v867_v24 = vpop.permute.xlu0 %866  ;;  %v818_v25 = vpop.permute.xlu1 %817 }
 0x172   : > { %v820_v48 = vsel %vm652_vm5, %v816_v20, %v818_v25  ;;  %v832_v2 = vadd.f32 %v818_v25, %v783_v47  ;;  %v873_v4 = vsel %vm706_vm6, %v867_v24, %v3150_v54  ;;  %v872_v30 = vsel %vm706_vm6, %v865_v21, %v867_v24 }
 0x173   : > { %v831_v5 = vadd.f32 %v820_v48, %v782_v61  ;;  %v984_v54 = vsel %vm652_vm5, %v3159_v7, %v3154_v58  ;;  %v1146_v58 = vld [vmem:[%s3779_s7] sm:$0xff] }
 0x174   : > { %v885_v9 = vadd.f32 %v873_v4, %v832_v2 }
 0x175   : > { %v1033_v29 = vpop.permute.xlu0 %1032  ;;  %v980_v31 = vpop.permute.xlu1 %979  ;;  %v884_v12 = vadd.f32 %v872_v30, %v831_v5 }
 0x176   : > { %v985_v45 = vsel %vm652_vm5, %v978_v22, %v980_v31  ;;  %v986_v53 = vsel %vm652_vm5, %v980_v31, %v982_v55  ;;  %v1038_v8 = vsel %vm706_vm6, %v1031_v23, %v1033_v29  ;;  %v1039_v51 = vsel %vm706_vm6, %v1033_v29, %v3152_v57 }
 0x177   : > { %v997_v3 = vadd.f32 %v985_v45, %v938_v50  ;;  %v998_v55 = vadd.f32 %v986_v53, %v939_v62  ;;  %v995_v57 = vadd.f32 %v984_v54, %v936_v15 }
 0x179   : > { %v3179_v40 = vpop.permute.xlu0 %1072  ;;  %v3181_v41 = vpop.permute.xlu1 %1074  ;;  %v1050_v11 = vadd.f32 %v1038_v8, %v997_v3  ;;  %v1051_v13 = vadd.f32 %v1039_v51, %v998_v55  ;;  %v1048_v19 = vadd.f32 %v1037_v16, %v995_v57 }
 0x17a   : > { %v1081_v43 = vmul.f32 %v3179_v40, %v1046_v36  ;;  %v3186_v44 = vsel %vm1076_vm7, %v3179_v40, %v3181_v41  ;;  %v1084_v6 = vmul.f32 %v3179_v40, %v1049_v60 }
 0x17b   : > { %v1082_v46 = vmul.f32 %v3186_v44, %v1047_v38  ;;  %v1085_v17 = vmul.f32 %v3186_v44, %v1050_v11  ;;  %v1086_v18 = vmul.f32 %v3181_v41, %v1051_v13  ;;  %v1083_v52 = vmul.f32 %v3181_v41, %v1048_v19 }
 0x17c   : > { %1093 = vrot.lane.b32.xlu0 %v1081_v43, %s3791_s21 }
 0x17d   : > { %1095 = vrot.lane.b32.xlu1 %v1082_v46, %s3791_s21 }
 0x180   : > { %898 = vrot.lane.b32.xlu0 %v883_v63, %s3793_s19 }
 0x181   : > { %1099 = vrot.lane.b32.xlu1 %v1084_v6, %s3791_s21 }
 0x184   : > { %902 = vrot.lane.b32.xlu0 %v885_v9, %s3793_s19 }
 0x185   : > { %900 = vrot.lane.b32.xlu1 %v884_v12, %s3793_s19 }
 0x186   : > { %v596_v59 = vpop.permute.xlu1 %595  ;;  %v601_v7 = vpop.permute.xlu0 %600 }
 0x187   : > { %v608_v46 = vmul.f32 %v601_v7, %v3088_v10  ;;  %v606_v47 = vmul.f32 0.0, %v601_v7  ;;  %v607_v5 = vmul.f32 %v601_v7, %v3074_v1  ;;  %v603_v55 = vmul.f32 0.0, %v596_v59 }
 0x188   : > { %1101 = vrot.lane.b32.xlu0 %v1085_v17, %s3791_s21  ;;  %v604_v30 = vmul.f32 %v596_v59, %v3056_v49  ;;  %v605_v1 = vmul.f32 %v596_v59, %v3064_v56 }
 0x189   : > { %1103 = vrot.lane.b32.xlu1 %v1086_v18, %s3791_s21 }
 0x18a   : > { %v649_v14 = vpop.permute.xlu1 %648  ;;  %v647_v20 = vpop.permute.xlu0 %646 }
 0x18b   : > { %v655_v45 = vsel %vm652_vm5, %v647_v20, %v649_v14 }
 0x18c   : > { %1097 = vrot.lane.b32.xlu0 %v1083_v52, %s3791_s21  ;;  %v666_v60 = vadd.f32 %v655_v45, %v606_v47  ;;  %s3811_s21 = smov 112  }
 0x18d   : > { %1150 = vperm.xlu1 %2760, %v1146_v58  }
 0x18e   : > { %v641_v21 = vpop.permute.xlu1 %640  ;;  %v643_v22 = vpop.permute.xlu0 %642 }
 0x18f   : > { %v653_v2 = vsel %vm652_vm5, %v641_v21, %v643_v22 }
 0x190   : > { %v663_v54 = vadd.f32 %v653_v2, %v603_v55 }
 0x192   : > { %v645_v23 = vpop.permute.xlu1 %644  ;;  %v701_v24 = vpop.permute.xlu0 %700 }
 0x193   : > { %v720_v63 = vadd.f32 %v701_v24, %v666_v60  ;;  %v654_v10 = vsel %vm652_vm5, %v643_v22, %v645_v23  ;;  %v665_v56 = vadd.f32 %v645_v23, %v605_v1 }
 0x194   : > { %v664_v16 = vadd.f32 %v654_v10, %v604_v30 }
 0x196   : > { %v695_v25 = vpop.permute.xlu1 %694  ;;  %v705_v26 = vpop.permute.xlu0 %704 }
 0x197   : > { %v717_v18 = vadd.f32 %v695_v25, %v663_v54 }
 0x19a   : > { %v699_v27 = vpop.permute.xlu1 %698  ;;  %v697_v28 = vpop.permute.xlu0 %696 }
 0x19b   : > { %v707_v12 = vsel %vm706_vm6, %v695_v25, %v697_v28  ;;  %v708_v59 = vsel %vm706_vm6, %v697_v28, %v699_v27 }
 0x19c   : > { %v718_v7 = vadd.f32 %v707_v12, %v664_v16 }
 0x19e   : > { %v3230_v29 = vpop.permute.xlu1 %746  ;;  %v3232_v31 = vpop.permute.xlu0 %744 }
 0x19f   : > { %v756_v8 = vmul.f32 %v3232_v31, %v720_v63  ;;  %v3259_v49 = vsel %vm748_vm9, %v3232_v31, %v3230_v29  ;;  %v753_v22 = vmul.f32 %v3232_v31, %v717_v18 }
 0x1a0   : > { %v754_v25 = vmul.f32 %v3259_v49, %v718_v7  ;;  %v1207_v7 = vld [vmem:[%s3781_s9] sm:$0xff] }
 0x1a2   : > { %v3234_v32 = vpop.permute.xlu1 %1131  ;;  %v3236_v33 = vpop.permute.xlu0 %1126 }
 0x1a6   : > { %v3238_v34 = vpop.permute.xlu1 %1155  ;;  %v651_v35 = vpop.permute.xlu0 %650 }
 0x1a7   : > { %v668_v50 = vadd.f32 %v651_v35, %v608_v46  ;;  %v656_v3 = vsel %vm652_vm5, %v649_v14, %v651_v35 }
 0x1a8   : > { %v667_v13 = vadd.f32 %v656_v3, %v607_v5 }
 0x1aa   : > { %v703_v37 = vpop.permute.xlu1 %702 }
 0x1ab   : > { %v710_v48 = vsel %vm706_vm6, %v703_v37, %v705_v26  ;;  %v709_v51 = vsel %vm706_vm6, %v701_v24, %v703_v37 }
 0x1ac   : > { %v722_v62 = vadd.f32 %v710_v48, %v668_v50  ;;  %v721_v19 = vadd.f32 %v709_v51, %v667_v13  ;;  %v719_v48 = vadd.f32 %v708_v59, %v665_v56 }
 0x1ae   : > { %v758_v9 = vmul.f32 %v3230_v29, %v722_v62  ;;  %v757_v23 = vmul.f32 %v3259_v49, %v721_v19 }
 0x1d2   : > { %v893_v36 = vpop.permute.xlu0 %892 }
 0x1db   : > { %v3240_v38 = vpop.permute.xlu0 %896  ;;  %v895_v39 = vpop.permute.xlu1 %894 }
 0x1dc   : > { %v905_v14 = vsel %vm904_vm8, %v893_v36, %v895_v39  ;;  %v906_v24 = vsel %vm904_vm8, %v895_v39, %v3240_v38 }
 0x1dd   : > { %v915_v36 = vadd.f32 %v905_v14, %v753_v22  ;;  %v916_v28 = vadd.f32 %v906_v24, %v754_v25  ;;  %v1292_v14 = vld [vmem:[%s3783_s11] sm:$0xff] }
 0x1de   : > { %v1206_v22 = vld [vmem:[%s3780_s8] sm:$0xff] }
 0x1ee   : > { %v1094_v42 = vpop.permute.xlu0 %1093 }
 0x1ef   : > { %v1096_v43 = vpop.permute.xlu1 %1095 }
 0x1f0   : > { %v1106_v46 = vsel %vm1105_vm10, %v1094_v42, %v1096_v43  ;;  %v755_v42 = vmul.f32 %v3230_v29, %v719_v48 }
 0x1f2   : > { %v899_v53 = vpop.permute.xlu0 %898 }
 0x1f3   : > { %v1100_v61 = vpop.permute.xlu1 %1099 }
 0x1f6   : > { %v903_v4 = vpop.permute.xlu0 %902 }
 0x1f7   : > { %v901_v6 = vpop.permute.xlu1 %900  ;;  %v920_v57 = vadd.f32 %v903_v4, %v758_v9 }
 0x1f8   : > { %v907_v11 = vsel %vm904_vm8, %v899_v53, %v901_v6  ;;  %v908_v26 = vsel %vm904_vm8, %v901_v6, %v903_v4  ;;  %v1116_v53 = vadd.f32 %v1106_v46, %v915_v36  ;;  %v917_v4 = vadd.f32 %v3240_v38, %v755_v42  ;;  %v1290_v46 = vld [vmem:[%s3782_s10] sm:$0xff] }
 0x1f9   : > { %v918_v15 = vadd.f32 %v907_v11, %v756_v8  ;;  %v919_v50 = vadd.f32 %v908_v26, %v757_v23  ;;  %v1291_v23 = vld [vmem:[%s3782_s10 + $0x8] sm:$0xff] }
 0x1fa   : > { %v1102_v17 = vpop.permute.xlu0 %1101 }
 0x1fb   : > { %v1108_v52 = vsel %vm1105_vm10, %v1100_v61, %v1102_v17  ;;  %v1104_v58 = vpop.permute.xlu1 %1103 }
 0x1fc   : > { %v1119_v20 = vadd.f32 %v1108_v52, %v918_v15  ;;  %v1121_v21 = vadd.f32 %v1104_v58, %v920_v57  ;;  %v1109_v47 = vsel %vm1105_vm10, %v1102_v17, %v1104_v58  ;;  %v1293_v58 = vld [vmem:[%s3783_s11 + $0x8] sm:$0xff] }
 0x1fd   : > { %v1120_v63 = vadd.f32 %v1109_v47, %v919_v50 }
 0x1fe   : > { %v1139_v35 = vadd.f32 %v3234_v32, %v1121_v21  ;;  %v1098_v37 = vpop.permute.xlu0 %1097  ;;  %v1137_v45 = vadd.f32 %v3234_v32, %v1119_v20 }
 0x1ff   : > { %v1107_v27 = vsel %vm1105_vm10, %v1096_v43, %v1098_v37  ;;  %v1134_v43 = vadd.f32 %v3236_v33, %v1116_v53  ;;  %v1138_v5 = vadd.f32 %v3234_v32, %v1120_v63  ;;  %v1118_v10 = vadd.f32 %v1098_v37, %v917_v4 }
 0x200   : > { %vm1145_vm11 = vcmp.ge.f32.partialorder %v1139_v35, 0.0  ;;  %v1163_v39 = vmul.f32 %v3238_v34, %v1139_v35  ;;  %v1117_v60 = vadd.f32 %v1107_v27, %v916_v28  ;;  %v1161_v62 = vmul.f32 %v3238_v34, %v1137_v45 }
 0x201   : > { %vm1143_vm12 = vcmp.ge.f32.partialorder %v1137_v45, 0.0  ;;  %vm1140_vm13 = vcmp.ge.f32.partialorder %v1134_v43, 0.0  ;;  %v1162_v9 = vmul.f32 %v3238_v34, %v1138_v5  ;;  %vm1144_vm15 = vcmp.ge.f32.partialorder %v1138_v5, 0.0 }
 0x202   : > { %v3276_v61 = vsel %vm1145_vm11, %v1139_v35, %v1163_v39  ;;  %v1135_v2 = vadd.f32 %v3236_v33, %v1117_v60  ;;  %v3284_v3 = vsel %vm1143_vm12, %v1137_v45, %v1161_v62  ;;  %v1136_v32 = vadd.f32 %v3236_v33, %v1118_v10 }
 0x203   : > { %1186 = vrot.lane.b32.xlu0 %v3276_v61, %s3801_s28  ;;  %v3300_v11 = vsel %vm1144_vm15, %v1138_v5, %v1162_v9 }
 0x204   : > { %vm1141_vm14 = vcmp.ge.f32.partialorder %v1135_v2, 0.0  ;;  %vm1142_vm1 = vcmp.ge.f32.partialorder %v1136_v32, 0.0 }
 0x207   : > { %1182 = vrot.lane.b32.xlu0 %v3284_v3, %s3801_s28 }
 0x208   : > { %v1151_v55 = vpop.permute.xlu1 %1150 }
 0x209   : > { %v1158_v6 = vmul.f32 %v1151_v55, %v1134_v43  ;;  %v1159_v8 = vmul.f32 %v1151_v55, %v1135_v2  ;;  %v1160_v38 = vmul.f32 %v1151_v55, %v1136_v32 }
 0x20b   : > { %v3290_v30 = vsel %vm1140_vm13, %v1134_v43, %v1158_v6  ;;  %v3292_v51 = vsel %vm1141_vm14, %v1135_v2, %v1159_v8  ;;  %v3304_v54 = vsel %vm1142_vm1, %v1136_v32, %v1160_v38 }
 0x20c   : > { %1176 = vrot.lane.b32.xlu1 %v3290_v30, %s3801_s28  ;;  %1178 = vrot.lane.b32.xlu0 %v3292_v51, %s3801_s28 }
 0x210   : > { %1184 = vrot.lane.b32.xlu1 %v3300_v11, %s3801_s28 }
 0x214   : > { %1180 = vrot.lane.b32.xlu1 %v3304_v54, %s3801_s28 }
 0x275   : > { %v1187_v34 = vpop.permute.xlu0 %1186 }
 0x279   : > { %v1183_v12 = vpop.permute.xlu0 %1182 }
 0x27e   : > { %v1177_v13 = vpop.permute.xlu1 %1176  ;;  %v1179_v16 = vpop.permute.xlu0 %1178 }
 0x27f   : > { %v1189_v19 = vsel %vm1188_vm2, %v1177_v13, %v1179_v16 }
 0x282   : > { %v1185_v15 = vpop.permute.xlu1 %1184 }
 0x283   : > { %v1191_v1 = vsel %vm1188_vm2, %v1183_v12, %v1185_v15  ;;  %v1192_v33 = vsel %vm1188_vm2, %v1185_v15, %v1187_v34 }
 0x284   : > { %v1200_v57 = vadd.f32 %v1192_v33, %v1191_v1 }
 0x286   : > { %v1181_v17 = vpop.permute.xlu1 %1180  ;;  %1201 = vadd.xlane.f32.xlu0 %v1200_v57 }
 0x287   : > { %v1190_v18 = vsel %vm1188_vm2, %v1179_v16, %v1181_v17 }
 0x288   : > { %v1197_v52 = vadd.f32 %v1190_v18, %v1189_v19 }
 0x28a   : > { %1198 = vadd.xlane.f32.xlu1 %v1197_v52 }
 0x29b   : > { %1301 = vperm.xlu1 %2760, %v1293_v58  }
 0x29c   : > { %1210 = vperm.xlu0 %2759, %v1207_v7  }
 0x2a0   : > { %1296 = vperm.xlu0 %2759, %v1292_v14  }
 0x30f   : > { %v1202_v20 = vpop.xlane.xlu0 %1201 }
 0x310   : > { %v1205_v21 = vmul.f32 0.00390625, %v1202_v20  ;;  %v2685_v20 = vld [vmem:[%s3777_s5 + $0xe8] sm:$0xff] }
 0x312   : > { %1245 = vmatprep.subr.mxu1 %v1205_v21 }
 0x313   : > { %v1199_v56 = vpop.xlane.xlu1 %1198  ;;  %1246 = vmatpush1.msra.mxu1 %v1205_v21  ;;  %v2679_v21 = vld [vmem:[%s3777_s5 + $0xd8] sm:$0xff] }
 0x314   : > { %v1204_v59 = vmul.f32 0.00390625, %v1199_v56  ;;  %v2681_v56 = vld [vmem:[%s3777_s5 + $0x108] sm:$0xff] }
 0x316   : > { %1247 = vmatprep.subr.mxu1 %v1204_v59 }
 0x317   : > { %1248 = vmatpush1.msra.mxu1 %v1204_v59  ;;  %v1211_v25 = vpop.permute.xlu0 %1210  ;;  %v1302_v50 = vpop.permute.xlu1 %1301  ;;  %v2678_v59 = vld [vmem:[%s3777_s5 + $0xd0] sm:$0xff] }
 0x318   : > { %2658 = vmatmul.mubr.msk.f32.vlgmr.msra.gmra.mxu1 %vm1213_vm3, %v1206_v22  ;;  %v2687_v22 = vld [vmem:[%s3777_s5 + $0x118] sm:$0xff] }
 0x319   : > { %1374 = vmatprep.mubr.f32.mxu1 %v2825_v0 }
 0x31b   : > { %v1297_v27 = vpop.permute.xlu0 %1296 }
 0x3d8   : > { %v1283_v24 = vpop.f32.mrf.mxu1 }
 0x3d9   : > { %v1284_v26 = vadd.f32 %v1283_v24, %v1211_v25  ;;  %v2684_v24 = vld [vmem:[%s3777_s5 + $0xe0] sm:$0xff] }
 0x3da   : > { %v1285_v35 = vpop.f32.mrf.mxu1 }
 0x3db   : > { %v1286_v37 = vadd.f32 %v1285_v35, %v1211_v25  ;;  %v1288_v36 = vmax.f32 %v1284_v26, 0.0  ;;  %v2686_v25 = vld [vmem:[%s3777_s5 + $0x110] sm:$0xff]  ;;  %v2680_v26 = vld [vmem:[%s3777_s5 + $0x100] sm:$0xff] }
 0x3dc   : > { %v2672_v35 = vld [vmem:[%s3777_s5 + $0xc0] sm:$0xff] }
 0x3dd   : > { %v1289_v45 = vmax.f32 %v1286_v37, 0.0  ;;  %v2673_v37 = vld [vmem:[%s3777_s5 + $0xc8] sm:$0xff] }
 0x3df   : > { %1340 = vmatprep.subr.mxu1 %v1289_v45  ;;  %v2677_v45 = vld [vmem:[%s3777_s5 + $0xa8] sm:$0xff] }
 0x3e0   : > { %1341 = vmatpush1.msra.mxu1 %v1288_v36  ;;  %v2675_v36 = vld [vmem:[%s3777_s5 + $0xf8] sm:$0xff] }
 0x3e1   : > { %2659 = vmatmul.mubr.msk.f32.vlgmr.msra.gmra.mxu1 %vm483_vm0, %v1290_v46  ;;  %v2674_v46 = vld [vmem:[%s3777_s5 + $0xf0] sm:$0xff] }
 0x3e2   : > { %1380 = vmatprep.mubr.f32.mxu1 %v2825_v0 }
 0x3e5   : > { %2660 = vmatmul.mubr.msk.f32.gmra.mxu1 %vm483_vm0, %v1291_v23  ;;  %v2683_v23 = vld [vmem:[%s3777_s5 + $0xb8] sm:$0xff] }
 0x3e6   : > { %2294 = vmatprep.mubr.f32.mxu1 %v2825_v0 }
 0x4a1   : > { %v1376_v28 = vpop.f32.mrf.mxu1 }
 0x4a2   : > { %v1377_v47 = vadd.f32 %v1376_v28, %v1297_v27  ;;  %v2676_v28 = vld [vmem:[%s3777_s5 + $0xa0] sm:$0xff] }
 0x4a3   : > { %v1378_v39 = vpop.f32.mrf.mxu1 }
 0x4a4   : > { %v1379_v48 = vadd.f32 %v1378_v39, %v1297_v27  ;;  %v1388_v60 = vmul.f32 0.16666667, %v1377_v47  ;;  %v2682_v27 = vld [vmem:[%s3777_s5 + $0xb0] sm:$0xff] }
 0x4a5   : > { %v1382_v53 = vpop.f32.mrf.mxu1 }
 0x4a6   : > { %v1383_v62 = vadd.f32 %v1382_v53, %v1302_v50  ;;  %v1389_v42 = vmul.f32 0.16666667, %v1379_v48  ;;  %v1392_v4 = vadd.f32 0.5, %v1388_v60 }
 0x4a7   : > { %v1384_v63 = vpop.f32.mrf.mxu1 }
 0x4a8   : > { %v1390_v43 = vmul.f32 0.16666667, %v1383_v62  ;;  %v1385_v2 = vadd.f32 %v1384_v63, %v1302_v50  ;;  %v1393_v10 = vadd.f32 0.5, %v1389_v42  ;;  %v1396_v9 = vmax.f32 %v1392_v4, 0.0 }
 0x4aa   : > { %v1394_v5 = vadd.f32 0.5, %v1390_v43  ;;  %v1391_v55 = vmul.f32 0.16666667, %v1385_v2  ;;  %v1397_v34 = vmax.f32 %v1393_v10, 0.0  ;;  %v1400_v13 = vmin.f32 %v1396_v9, 1.0  ;;  %v1430_v43 = vld [vmem:[%s3784_s12] sm:$0xff] }
 0x4ac   : > { %v1398_v6 = vmax.f32 %v1394_v5, 0.0  ;;  %v1395_v8 = vadd.f32 0.5, %v1391_v55  ;;  %v1401_v15 = vmin.f32 %v1397_v34, 1.0 }
 0x4ae   : > { %v1402_v32 = vmin.f32 %v1398_v6, 1.0  ;;  %v1399_v38 = vmax.f32 %v1395_v8, 0.0 }
 0x4b0   : > { %v1403_v12 = vmin.f32 %v1399_v38, 1.0  ;;  %1412 = vrot.lane.b32.xlu1 %v1402_v32, %s3797_s22 }
 0x4b2   : > { %1414 = vrot.lane.b32.xlu0 %v1403_v12, %s3797_s22 }
 0x4b4   : > { %1408 = vrot.lane.b32.xlu1 %v1400_v13, %s3797_s22 }
 0x4b6   : > { %1410 = vrot.lane.b32.xlu0 %v1401_v15, %s3797_s22 }
 0x522   : > { %v1413_v1 = vpop.permute.xlu1 %1412 }
 0x523   : > { %v1427_v33 = vmul.f32 %v1413_v1, %v3284_v3 }
 0x524   : > { %v1415_v16 = vpop.permute.xlu0 %1414 }
 0x525   : > { %v1417_v57 = vsel %vm748_vm9, %v1413_v1, %v1415_v16  ;;  %1443 = vrot.lane.b32.xlu1 %v1427_v33, %s3801_s28  ;;  %v1429_v3 = vmul.f32 %v1415_v16, %v3276_v61  ;;  %v2665_v61 = vld [vmem:[%s3775_s3 + $0x18] sm:$0xff] }
 0x526   : > { %v1428_v17 = vmul.f32 %v1417_v57, %v3300_v11  ;;  %v1409_v18 = vpop.permute.xlu1 %1408  ;;  %v1533_v11 = vld [vmem:[%s3785_s13] sm:$0xff] }
 0x527   : > { %v1424_v14 = vmul.f32 %v1409_v18, %v3290_v30  ;;  %v2669_v30 = vld [vmem:[%s3776_s4 + $0x18] sm:$0xff] }
 0x528   : > { %v1411_v19 = vpop.permute.xlu0 %1410 }
 0x529   : > { %v1416_v52 = vsel %vm748_vm9, %v1409_v18, %v1411_v19  ;;  %1445 = vrot.lane.b32.xlu1 %v1428_v17, %s3801_s28  ;;  %v1426_v7 = vmul.f32 %v1411_v19, %v3304_v54  ;;  %v2668_v54 = vld [vmem:[%s3776_s4 + $0x10] sm:$0xff]  ;;  %v2761_v18 = vld [vmem:[%s2977_s27] sm:$0xff] }
 0x52a   : > { %v1425_v58 = vmul.f32 %v1416_v52, %v3292_v51  ;;  %v2664_v51 = vld [vmem:[%s3775_s3 + $0x10] sm:$0xff] }
 0x52c   : > { %1439 = vrot.lane.b32.xlu0 %v1425_v58, %s3801_s28  ;;  %v2762_v58 = vld [vmem:[%s2977_s27 + $0x8] sm:$0xff] }
 0x52d   : > { %1441 = vrot.lane.b32.xlu1 %v1426_v7, %s3801_s28 }
 0x530   : > { %1447 = vrot.lane.b32.xlu0 %v1429_v3, %s3801_s28 }
 0x531   : > { %1536 = vperm.xlu1 %2760, %v1533_v11  }
 0x534   : > { %1437 = vrot.lane.b32.xlu0 %v1424_v14, %s3801_s28  ;;  %v2662_v14 = vld [vmem:[%s3774_s2 + $0x10] sm:$0xff]  ;;  %s3815_s28 = smov 17  }
 0x535   : > { %1549 = vperm.xlu1 %2760, %v2664_v51   ;;  %v2663_v51 = vld [vmem:[%s3774_s2 + $0x18] sm:$0xff] }
 0x538   : > { %1554 = vperm.xlu0 %2759, %v2665_v61  }
 0x539   : > { %1649 = vperm.xlu1 %2760, %v2668_v54  }
 0x53c   : > { %1654 = vperm.xlu0 %2759, %v2669_v30  }
 0x53d   : > { %1998 = vperm.xlu1 %2760, %v2685_v20  }
 0x540   : > { %1843 = vperm.xlu0 %2759, %v2679_v21  }
 0x541   : > { %1886 = vperm.xlu1 %2760, %v2681_v56  }
 0x544   : > { %1838 = vperm.xlu0 %2759, %v2678_v59  }
 0x545   : > { %2051 = vperm.xlu1 %2760, %v2687_v22  }
 0x548   : > { %1993 = vperm.xlu0 %2759, %v2684_v24  }
 0x549   : > { %2046 = vperm.xlu1 %2760, %v2686_v25  }
 0x54c   : > { %1881 = vperm.xlu0 %2759, %v2680_v26  }
 0x54d   : > { %1695 = vperm.xlu1 %2760, %v2672_v35  }
 0x550   : > { %1700 = vperm.xlu0 %2759, %v2673_v37  }
 0x551   : > { %1818 = vperm.xlu1 %2760, %v2677_v45  }
 0x554   : > { %1753 = vperm.xlu0 %2759, %v2675_v36  }
 0x555   : > { %1748 = vperm.xlu1 %2760, %v2674_v46  }
 0x558   : > { %1973 = vperm.xlu0 %2759, %v2683_v23  }
 0x559   : > { %1968 = vperm.xlu1 %2760, %v2682_v27  }
 0x55c   : > { %1813 = vperm.xlu0 %2759, %v2676_v28  }
 0x597   : > { %v1444_v47 = vpop.permute.xlu1 %1443 }
 0x59b   : > { %v1446_v39 = vpop.permute.xlu1 %1445 }
 0x59c   : > { %v1451_v62 = vsel %vm1188_vm2, %v1444_v47, %v1446_v39 }
 0x59e   : > { %v1440_v48 = vpop.permute.xlu0 %1439 }
 0x59f   : > { %v1442_v50 = vpop.permute.xlu1 %1441 }
 0x5a0   : > { %v1450_v63 = vsel %vm1188_vm2, %v1440_v48, %v1442_v50 }
 0x5a2   : > { %v1448_v53 = vpop.permute.xlu0 %1447 }
 0x5a3   : > { %v1452_v60 = vsel %vm1188_vm2, %v1446_v39, %v1448_v53 }
 0x5a4   : > { %1488 = vmatprep.subr.mxu0 %v1452_v60 }
 0x5a5   : > { %1489 = vmatpush1.msra.mxu0 %v1451_v62 }
 0x5a6   : > { %1490 = vmatprep.subr.mxu0 %v1450_v63  ;;  %v1438_v42 = vpop.permute.xlu0 %1437 }
 0x5a7   : > { %v1449_v2 = vsel %vm1188_vm2, %v1438_v42, %v1440_v48 }
 0x5a8   : > { %1491 = vmatpush1.msra.mxu0 %v1449_v2 }
 0x5a9   : > { %2661 = vmatmul.mubr.msk.f32.vlgmr.msra.gmra.mxu0 %vm1213_vm3, %v1430_v43 }
 0x5aa   : > { %1627 = vmatprep.mubr.f32.mxu0 %v2825_v0 }
 0x5ac   : > { %v1537_v4 = vpop.permute.xlu1 %1536 }
 0x5b0   : > { %v1550_v5 = vpop.permute.xlu1 %1549 }
 0x5b3   : > { %v3426_v55 = vpop.permute.xlu0 %1554 }
 0x5b4   : > { %v1650_v10 = vpop.permute.xlu1 %1649 }
 0x5b7   : > { %v3428_v6 = vpop.permute.xlu0 %1654 }
 0x5b8   : > { %v3430_v8 = vpop.permute.xlu1 %1998 }
 0x5b9   : > { %v2006_v9 = vmul.f32 0.0, %v3430_v8 }
 0x5bb   : > { %2023 = vrot.lane.b32.xlu0 %v2006_v9, %s3811_s21  ;;  %v3434_v32 = vpop.permute.xlu0 %1843 }
 0x5bc   : > { %v3436_v38 = vpop.permute.xlu1 %1886 }
 0x5bd   : > { %v1894_v34 = vmul.f32 0.0, %v3436_v38 }
 0x5bf   : > { %1911 = vrot.lane.b32.xlu1 %v1894_v34, %s3812_s24  ;;  %v1839_v12 = vpop.permute.xlu0 %1838 }
 0x5c0   : > { %v3440_v13 = vpop.permute.xlu1 %2051 }
 0x5c1   : > { %v2059_v15 = vmul.f32 0.0, %v3440_v13 }
 0x5c3   : > { %2076 = vrot.lane.b32.xlu1 %v2059_v15, %s3812_s24  ;;  %v1994_v1 = vpop.permute.xlu0 %1993 }
 0x5c4   : > { %v2003_v33 = vmul.f32 0.0, %v1994_v1  ;;  %v2047_v35 = vpop.permute.xlu1 %2046 }
 0x5c6   : > { %2017 = vrot.lane.b32.xlu0 %v2003_v33, %s3811_s21 }
 0x5c7   : > { %v1882_v16 = vpop.permute.xlu0 %1881 }
 0x5c8   : > { %v1891_v57 = vmul.f32 0.0, %v1882_v16 }
 0x5ca   : > { %1905 = vrot.lane.b32.xlu0 %v1891_v57, %s3812_s24 }
 0x5cb   : > { %v1701_v9 = vpop.permute.xlu0 %1700 }
 0x669   : > { %v1526_v17 = vpop.f32.mrf.mxu0 }
 0x66a   : > { %v1531_v19 = vadd.f32 %v2761_v18, %v1526_v17 }
 0x66b   : > { %v1528_v52 = vpop.f32.mrf.mxu0 }
 0x66c   : > { %v1532_v7 = vadd.f32 %v2762_v58, %v1528_v52  ;;  %v3450_v11 = vadd.f32 %v1537_v4, %v1531_v19  ;;  %v2688_v52 = vld [vmem:[%s3778_s6 + $0x10] sm:$0xff] }
 0x66e   : > { %v3448_v3 = vadd.f32 %v1537_v4, %v1532_v7  ;;  %v2689_v7 = vld [vmem:[%s3778_s6 + $0x18] sm:$0xff] }
 0x670   : > { %1593 = vmatprep.subr.mxu0 %v3448_v3 }
 0x671   : > { %1594 = vmatpush1.msra.mxu0 %v3450_v11 }
 0x672   : > { %2666 = vmatmul.mubr.msk.f32.vlgmr.msra.gmra.mxu0 %vm483_vm0, %v2662_v14 }
 0x673   : > { %1633 = vmatprep.mubr.f32.mxu0 %v2825_v0 }
 0x676   : > { %2667 = vmatmul.mubr.msk.f32.gmra.mxu0 %vm483_vm0, %v2663_v51  ;;  %v2691_v51 = vld [vmem:[%s3779_s7 + $0x18] sm:$0xff] }
 0x677   : > { %2539 = vmatprep.mubr.f32.mxu0 %v2825_v0 }
 0x732   : > { %v1629_v61 = vpop.f32.mrf.mxu0 }
 0x733   : > { %v1630_v54 = vadd.f32 %v1629_v61, %v1550_v5 }
 0x734   : > { %v1631_v30 = vpop.f32.mrf.mxu0 }
 0x735   : > { %vm1640_vm4 = vcmp.ge.f32.partialorder %v1630_v54, 0.0  ;;  %v1657_v20 = vmul.f32 %v1650_v10, %v1630_v54  ;;  %v1632_v21 = vadd.f32 %v1631_v30, %v1550_v5 }
 0x736   : > { %v1635_v56 = vpop.f32.mrf.mxu0 }
 0x737   : > { %v3464_v59 = vsel %vm1640_vm4, %v1630_v54, %v1657_v20  ;;  %v1658_v25 = vmul.f32 %v1650_v10, %v1632_v21  ;;  %v1636_v26 = vadd.f32 %v1635_v56, %v3426_v55  ;;  %vm1641_vm7 = vcmp.ge.f32.partialorder %v1632_v21, 0.0  ;;  %v2671_v10 = vld [vmem:[%s3777_s5 + $0x98] sm:$0xff] }
 0x738   : > { %v1846_v22 = vmul.f32 %v1839_v12, %v3464_v59  ;;  %v2001_v24 = vmul.f32 %v1994_v1, %v3464_v59  ;;  %v2054_v37 = vmul.f32 %v2047_v35, %v3464_v59  ;;  %v1889_v45 = vmul.f32 %v1882_v16, %v3464_v59  ;;  %v1637_v23 = vpop.f32.mrf.mxu0 }
 0x739   : > { %v3473_v36 = vsel %vm1641_vm7, %v1632_v21, %v1658_v25  ;;  %v1659_v46 = vmul.f32 %v3428_v6, %v1636_v26  ;;  %vm1642_vm11 = vcmp.ge.f32.partialorder %v1636_v26, 0.0  ;;  %v1638_v39 = vadd.f32 %v1637_v23, %v3426_v55 }
 0x73a   : > { %1854 = vrot.lane.b32.xlu1 %v1846_v22, %s3811_s21  ;;  %2013 = vrot.lane.b32.xlu0 %v2001_v24, %s3811_s21  ;;  %v2002_v27 = vmul.f32 %v1994_v1, %v3473_v36  ;;  %v1847_v28 = vmul.f32 %v1839_v12, %v3473_v36  ;;  %v1890_v48 = vmul.f32 %v1882_v16, %v3473_v36 }
 0x73b   : > { %v3480_v47 = vsel %vm1642_vm11, %v1636_v26, %v1659_v46  ;;  %v1660_v53 = vmul.f32 %v3428_v6, %v1638_v39  ;;  %vm1643_vm12 = vcmp.ge.f32.partialorder %v1638_v39, 0.0  ;;  %v2055_v55 = vmul.f32 %v2047_v35, %v3473_v36 }
 0x73c   : > { %v1848_v50 = vmul.f32 %v3434_v32, %v3480_v47  ;;  %v1892_v60 = vmul.f32 %v3436_v38, %v3480_v47  ;;  %v2004_v62 = vmul.f32 %v3430_v8, %v3480_v47  ;;  %v2057_v42 = vmul.f32 %v3440_v13, %v3480_v47 }
 0x73d   : > { %v3495_v63 = vsel %vm1643_vm12, %v1638_v39, %v1660_v53  ;;  %v2056_v6 = vmul.f32 0.0, %v2047_v35  ;;  %v1707_v34 = vmul.f32 %v1701_v9, %v3480_v47 }
 0x73e   : > { %2066 = vrot.lane.b32.xlu1 %v2054_v37, %s3812_s24  ;;  %1901 = vrot.lane.b32.xlu0 %v1889_v45, %s3812_s24  ;;  %v1893_v43 = vmul.f32 %v3436_v38, %v3495_v63  ;;  %v1849_v2 = vmul.f32 %v3434_v32, %v3495_v63  ;;  %v2058_v4 = vmul.f32 %v3440_v13, %v3495_v63  ;;  %v2670_v32 = vld [vmem:[%s3777_s5 + $0x90] sm:$0xff]  ;;  %v1696_v38 = vpop.permute.xlu1 %1695  ;;  %v1754_v13 = vpop.permute.xlu0 %1753 }
 0x73f   : > { %v2005_v5 = vmul.f32 %v3430_v8, %v3495_v63  ;;  %v1706_v8 = vmul.f32 0.0, %v1701_v9  ;;  %v1704_v12 = vmul.f32 %v1696_v38, %v3464_v59  ;;  %v1703_v15 = vmul.f32 0.0, %v1696_v38 }
 0x740   : > { %v1759_v1 = vmul.f32 %v1754_v13, %v3480_v47  ;;  %v1761_v16 = vmul.f32 0.0, %v1754_v13  ;;  %v1705_v57 = vmul.f32 %v1696_v38, %v3473_v36  ;;  %v1708_v14 = vmul.f32 %v1701_v9, %v3495_v63 }
 0x741   : > { %v1760_v61 = vmul.f32 %v1754_v13, %v3495_v63 }
 0x742   : > { %2015 = vrot.lane.b32.xlu1 %v2002_v27, %s3811_s21  ;;  %1856 = vrot.lane.b32.xlu0 %v1847_v28, %s3811_s21  ;;  %v3529_v33 = vpop.permute.xlu1 %1818  ;;  %v3554_v54 = vpop.permute.xlu0 %1973 }
 0x743   : > { %v1824_v38 = vmul.f32 0.0, %v3529_v33 }
 0x746   : > { %1903 = vrot.lane.b32.xlu1 %v1890_v48, %s3812_s24  ;;  %1858 = vrot.lane.b32.xlu0 %v1848_v50, %s3811_s21  ;;  %v1749_v17 = vpop.permute.xlu1 %1748  ;;  %v1814_v30 = vpop.permute.xlu0 %1813 }
 0x747   : > { %v1756_v18 = vmul.f32 %v1749_v17, %v3464_v59  ;;  %v1757_v19 = vmul.f32 %v1749_v17, %v3473_v36  ;;  %v1758_v58 = vmul.f32 0.0, %v1749_v17  ;;  %v1821_v37 = vmul.f32 0.0, %v1814_v30 }
 0x748   : > { %v1822_v53 = vmul.f32 %v1814_v30, %v3464_v59 }
 0x74a   : > { %1907 = vrot.lane.b32.xlu1 %v1892_v60, %s3812_s24  ;;  %2019 = vrot.lane.b32.xlu0 %v2004_v62, %s3811_s21  ;;  %v1969_v20 = vpop.permute.xlu1 %1968  ;;  %v3556_v21 = vpop.permute.xlu0 %2023  ;;  %v1823_v60 = vmul.f32 %v1814_v30, %v3473_v36  ;;  %v1980_v30 = vmul.f32 %v3554_v54, %v3480_v47 }
 0x74b   : > { %v1976_v50 = vmul.f32 0.0, %v1969_v20 }
 0x74e   : > { %2072 = vrot.lane.b32.xlu1 %v2057_v42, %s3812_s24  ;;  %1909 = vrot.lane.b32.xlu0 %v1893_v43, %s3812_s24  ;;  %v1912_v56 = vpop.permute.xlu1 %1911  ;;  %v2018_v22 = vpop.permute.xlu0 %2017 }
 0x752   : > { %1860 = vrot.lane.b32.xlu1 %v1849_v2, %s3811_s21  ;;  %2074 = vrot.lane.b32.xlu0 %v2058_v4, %s3812_s24  ;;  %v3558_v24 = vpop.permute.xlu1 %2076  ;;  %v1906_v25 = vpop.permute.xlu0 %1905 }
 0x756   : > { %2021 = vrot.lane.b32.xlu1 %v2005_v5, %s3811_s21  ;;  %2068 = vrot.lane.b32.xlu0 %v2055_v55, %s3812_s24 }
 0x75a   : > { %2070 = vrot.lane.b32.xlu1 %v2056_v6, %s3812_s24  ;;  %1675 = vperm.xlu0 %2759, %v2671_v10  }
 0x75e   : > { %1670 = vperm.xlu1 %2760, %v2670_v32   ;;  %1721 = vrot.lane.b32.xlu0 %v1706_v8, %s3811_s21 }
 0x762   : > { %1723 = vrot.lane.b32.xlu1 %v1707_v34, %s3811_s21  ;;  %1717 = vrot.lane.b32.xlu0 %v1704_v12, %s3811_s21 }
 0x766   : > { %1715 = vrot.lane.b32.xlu1 %v1703_v15, %s3811_s21  ;;  %1774 = vrot.lane.b32.xlu0 %v1759_v1, %s3812_s24 }
 0x76a   : > { %1719 = vrot.lane.b32.xlu1 %v1705_v57, %s3811_s21  ;;  %1778 = vrot.lane.b32.xlu0 %v1761_v16, %s3812_s24  ;;  %v1826_v16 = vmul.f32 %v3529_v33, %v3495_v63 }
 0x76e   : > { %1768 = vrot.lane.b32.xlu1 %v1756_v18, %s3812_s24  ;;  %1770 = vrot.lane.b32.xlu0 %v1757_v19, %s3812_s24 }
 0x772   : > { %1772 = vrot.lane.b32.xlu1 %v1758_v58, %s3812_s24  ;;  %2139 = vperm.xlu0 %2759, %v2688_v52   ;;  %v1977_v52 = vmul.f32 %v1969_v20, %v3464_v59 }
 0x776   : > { %2144 = vperm.xlu1 %2760, %v2689_v7   ;;  %1725 = vrot.lane.b32.xlu0 %v1708_v14, %s3811_s21  ;;  %s3813_s21 = smov 127   ;;  %v1979_v14 = vmul.f32 0.0, %v3554_v54 }
 0x77a   : > { %2169 = vperm.xlu1 %2760, %v2691_v51  }
 0x77e   : > { %1776 = vrot.lane.b32.xlu1 %v1760_v61, %s3812_s24  ;;  %s3814_s24 = smov 126  }
 0x7ac   : > { %v1855_v26 = vpop.permute.xlu1 %1854  ;;  %v2014_v35 = vpop.permute.xlu0 %2013 }
 0x7ad   : > { %v1870_v45 = vadd.f32 %v1855_v26, %v1821_v37  ;;  %v2035_v62 = vadd.f32 %v2014_v35, %v1976_v50 }
 0x7b0   : > { %v2067_v46 = vpop.permute.xlu1 %2066  ;;  %v1902_v23 = vpop.permute.xlu0 %1901 }
 0x7b1   : > { %v1923_v27 = vadd.f32 %v1902_v23, %v1870_v45  ;;  %v2088_v10 = vadd.f32 %v2067_v46, %v2035_v62  ;;  %v1978_v45 = vmul.f32 %v1969_v20, %v3473_v36  ;;  %v1825_v20 = vmul.f32 %v3529_v33, %v3480_v47 }
 0x7b3   : > { %1935 = vrot.lane.b32.xlu0 %v1923_v27, %s3813_s21  ;;  %v2094_v34 = vmul.f32 %v2088_v10, %v3179_v40 }
 0x7b4   : > { %v2016_v28 = vpop.permute.xlu1 %2015  ;;  %v1857_v39 = vpop.permute.xlu0 %1856 }
 0x7b5   : > { %v1862_v48 = vsel %vm652_vm5, %v1855_v26, %v1857_v39  ;;  %v1872_v43 = vadd.f32 %v1857_v39, %v1823_v60  ;;  %v2025_v18 = vsel %vm652_vm5, %v2014_v35, %v2016_v28  ;;  %v2026_v26 = vsel %vm652_vm5, %v2016_v28, %v2018_v22 }
 0x7b6   : > { %v1871_v42 = vadd.f32 %v1862_v48, %v1822_v53  ;;  %v2036_v51 = vadd.f32 %v2025_v18, %v1977_v52  ;;  %v2037_v48 = vadd.f32 %v2026_v26, %v1978_v45 }
 0x7b8   : > { %v1904_v2 = vpop.permute.xlu1 %1903  ;;  %v1859_v4 = vpop.permute.xlu0 %1858 }
 0x7b9   : > { %v1913_v5 = vsel %vm706_vm6, %v1902_v23, %v1904_v2  ;;  %v1914_v55 = vsel %vm706_vm6, %v1904_v2, %v1906_v25  ;;  %v1873_v12 = vadd.f32 %v1859_v4, %v1824_v38 }
 0x7ba   : > { %v1924_v6 = vadd.f32 %v1913_v5, %v1871_v42  ;;  %v1925_v9 = vadd.f32 %v1914_v55, %v1872_v43  ;;  %v1981_v42 = vmul.f32 %v3554_v54, %v3495_v63 }
 0x7bc   : > { %v1908_v32 = vpop.permute.xlu1 %1907  ;;  %1939 = vrot.lane.b32.xlu0 %v1925_v9, %s3813_s21  ;;  %1937 = vrot.lane.b32.xlu1 %v1924_v6, %s3813_s21  ;;  %v2020_v8 = vpop.permute.xlu0 %2019  ;;  %v2690_v6 = vld [vmem:[%s3779_s7 + $0x10] sm:$0xff] }
 0x7bd   : > { %v1926_v1 = vadd.f32 %v1908_v32, %v1873_v12 }
 0x7c0   : > { %v2073_v13 = vpop.permute.xlu1 %2072  ;;  %2106 = vrot.lane.b32.xlu0 %v2094_v34, %s3814_s24  ;;  %v1910_v15 = vpop.permute.xlu0 %1909 }
 0x7c1   : > { %v1916_v58 = vsel %vm706_vm6, %v1910_v15, %v1912_v56  ;;  %v2038_v56 = vadd.f32 %v2020_v8, %v1979_v14  ;;  %v1915_v33 = vsel %vm706_vm6, %v1908_v32, %v1910_v15 }
 0x7c3   : > { %v2091_v50 = vadd.f32 %v2073_v13, %v2038_v56 }
 0x7c4   : > { %v1861_v57 = vpop.permute.xlu1 %1860  ;;  %1941 = vrot.lane.b32.xlu0 %v1926_v1, %s3813_s21  ;;  %v2075_v17 = vpop.permute.xlu0 %2074 }
 0x7c5   : > { %v1875_v19 = vadd.f32 %v1861_v57, %v1826_v16  ;;  %v2080_v39 = vsel %vm706_vm6, %v2073_v13, %v2075_v17  ;;  %v1863_v22 = vsel %vm652_vm5, %v1859_v4, %v1861_v57  ;;  %v2097_v5 = vmul.f32 %v2091_v50, %v3179_v40 }
 0x7c6   : > { %v1874_v55 = vadd.f32 %v1863_v22, %v1825_v20  ;;  %v2081_v54 = vsel %vm706_vm6, %v2075_v17, %v3558_v24 }
 0x7c7   : > { %v1928_v7 = vadd.f32 %v1916_v58, %v1875_v19 }
 0x7c8   : > { %v2022_v61 = vpop.permute.xlu1 %2021  ;;  %v2069_v25 = vpop.permute.xlu0 %2068  ;;  %v1927_v10 = vadd.f32 %v1915_v33, %v1874_v55 }
 0x7c9   : > { %v2027_v37 = vsel %vm652_vm5, %v2020_v8, %v2022_v61  ;;  %v2078_v35 = vsel %vm706_vm6, %v2067_v46, %v2069_v25  ;;  %1945 = vrot.lane.b32.xlu0 %v1928_v7, %s3813_s21  ;;  %v2028_v46 = vsel %vm652_vm5, %v2022_v61, %v3556_v21 }
 0x7ca   : > { %v2039_v23 = vadd.f32 %v2027_v37, %v1980_v30  ;;  %v2089_v27 = vadd.f32 %v2078_v35, %v2036_v51  ;;  %v2040_v4 = vadd.f32 %v2028_v46, %v1981_v42 }
 0x7cc   : > { %v2092_v53 = vadd.f32 %v2080_v39, %v2039_v23  ;;  %v2095_v60 = vmul.f32 %v2089_v27, %v3186_v44  ;;  %v2071_v62 = vpop.permute.xlu1 %2070 }
 0x7cd   : > { %v2079_v28 = vsel %vm706_vm6, %v2069_v25, %v2071_v62 }
 0x7ce   : > { %v2098_v43 = vmul.f32 %v2092_v53, %v3186_v44  ;;  %v2090_v2 = vadd.f32 %v2079_v28, %v2037_v48  ;;  %2108 = vrot.lane.b32.xlu1 %v2095_v60, %s3814_s24  ;;  %v2093_v44 = vadd.f32 %v2081_v54, %v2040_v4 }
 0x7d0   : > { %2114 = vrot.lane.b32.xlu0 %v2098_v43, %s3814_s24  ;;  %v2096_v21 = vmul.f32 %v2090_v2, %v3181_v41  ;;  %v2099_v40 = vmul.f32 %v2093_v44, %v3181_v41 }
 0x7d2   : > { %2112 = vrot.lane.b32.xlu1 %v2097_v5, %s3814_s24 }
 0x7d4   : > { %2110 = vrot.lane.b32.xlu0 %v2096_v21, %s3814_s24 }
 0x7d5   : > { %v1676_v9 = vpop.permute.xlu0 %1675 }
 0x7d6   : > { %1943 = vrot.lane.b32.xlu1 %v1927_v10, %s3813_s21  ;;  %v1681_v25 = vmul.f32 0.0, %v1676_v9  ;;  %v1683_v35 = vmul.f32 %v1676_v9, %v3495_v63  ;;  %v1682_v63 = vmul.f32 %v1676_v9, %v3480_v47  ;;  %s2767_s21 = sshll.u32 %s2834_s17, 4  ;;  %s2768_s21 = int_to_ptr.vmem [resolvable:$false] %s2767_s21 }
 0x7d9   : > { %v1722_v32 = vpop.permute.xlu0 %1721  ;;  %v1671_v8 = vpop.permute.xlu1 %1670 }
 0x7da   : > { %2116 = vrot.lane.b32.xlu1 %v2099_v40, %s3814_s24  ;;  %v1678_v60 = vmul.f32 0.0, %v1671_v8  ;;  %v1679_v62 = vmul.f32 %v1671_v8, %v3464_v59  ;;  %v1680_v47 = vmul.f32 %v1671_v8, %v3473_v36 }
 0x7dd   : > { %v1718_v38 = vpop.permute.xlu0 %1717  ;;  %v1724_v24 = vpop.permute.xlu1 %1723 }
 0x7de   : > { %2164 = vperm.xlu1 %2760, %v2690_v6   ;;  %v1729_v61 = vsel %vm652_vm5, %v1722_v32, %v1724_v24 }
 0x7df   : > { %v1740_v26 = vadd.f32 %v1729_v61, %v1681_v25 }
 0x7e1   : > { %v1775_v34 = vpop.permute.xlu0 %1774  ;;  %v1716_v12 = vpop.permute.xlu1 %1715 }
 0x7e2   : > { %v1793_v27 = vadd.f32 %v1775_v34, %v1740_v26  ;;  %v1727_v48 = vsel %vm652_vm5, %v1716_v12, %v1718_v38 }
 0x7e3   : > { %v1737_v20 = vadd.f32 %v1727_v48, %v1678_v60 }
 0x7e4   : > { %v1799_v42 = vmul.f32 %v1793_v27, %v3232_v31 }
 0x7e5   : > { %v1779_v13 = vpop.permute.xlu0 %1778  ;;  %v1720_v15 = vpop.permute.xlu1 %1719 }
 0x7e6   : > { %v1728_v50 = vsel %vm652_vm5, %v1718_v38, %v1720_v15 }
 0x7e7   : > { %v1738_v43 = vadd.f32 %v1728_v50, %v1679_v62 }
 0x7e9   : > { %v1771_v1 = vpop.permute.xlu0 %1770  ;;  %v1769_v16 = vpop.permute.xlu1 %1768 }
 0x7ea   : > { %v1780_v22 = vsel %vm706_vm6, %v1769_v16, %v1771_v1  ;;  %v1790_v21 = vadd.f32 %v1769_v16, %v1737_v20 }
 0x7eb   : > { %v1791_v59 = vadd.f32 %v1780_v22, %v1738_v43 }
 0x7ec   : > { %v1796_v12 = vmul.f32 %v1790_v21, %v3232_v31 }
 0x7ed   : > { %v3611_v57 = vpop.permute.xlu0 %2139  ;;  %v1773_v41 = vpop.permute.xlu1 %1772 }
 0x7f1   : > { %v1726_v17 = vpop.permute.xlu0 %1725  ;;  %v3613_v18 = vpop.permute.xlu1 %2144 }
 0x7f2   : > { %v1742_v56 = vadd.f32 %v1726_v17, %v1683_v35  ;;  %v1730_v46 = vsel %vm652_vm5, %v1724_v24, %v1726_v17  ;;  %v1781_v17 = vsel %vm706_vm6, %v1771_v1, %v1773_v41 }
 0x7f3   : > { %v1741_v33 = vadd.f32 %v1730_v46, %v1682_v63 }
 0x7f5   : > { %v3617_v58 = vpop.permute.xlu1 %2169 }
 0x7f9   : > { %v1777_v14 = vpop.permute.xlu1 %1776 }
 0x7fa   : > { %v1783_v45 = vsel %vm706_vm6, %v1777_v14, %v1779_v13  ;;  %v1782_v5 = vsel %vm706_vm6, %v1775_v34, %v1777_v14  ;;  %v1739_v34 = vadd.f32 %v1720_v15, %v1680_v47  ;;  %v1797_v13 = vmul.f32 %v1791_v59, %v3259_v49 }
 0x7fb   : > { %v1795_v53 = vadd.f32 %v1783_v45, %v1742_v56  ;;  %v1794_v40 = vadd.f32 %v1782_v5, %v1741_v33 }
 0x7fc   : > { %v1792_v1 = vadd.f32 %v1781_v17, %v1739_v34 }
 0x7fd   : > { %v1801_v55 = vmul.f32 %v1795_v53, %v3230_v29  ;;  %v1800_v31 = vmul.f32 %v1794_v40, %v3259_v49 }
 0x7fe   : > { %v1798_v49 = vmul.f32 %v1792_v1, %v3230_v29 }
 0x825   : > { %v1936_v19 = vpop.permute.xlu0 %1935 }
 0x82e   : > { %v3615_v52 = vpop.permute.xlu0 %1939  ;;  %v1938_v51 = vpop.permute.xlu1 %1937 }
 0x82f   : > { %v1947_v32 = vsel %vm904_vm8, %v1936_v19, %v1938_v51  ;;  %v1948_v16 = vsel %vm904_vm8, %v1938_v51, %v3615_v52 }
 0x830   : > { %v1957_v61 = vadd.f32 %v1947_v32, %v1796_v12  ;;  %v2692_v32 = vld [vmem:[%s3780_s8 + $0x8] sm:$0xff] }
 0x832   : > { %v2107_v7 = vpop.permute.xlu0 %2106 }
 0x836   : > { %v1942_v30 = vpop.permute.xlu0 %1941 }
 0x83b   : > { %v1946_v23 = vpop.permute.xlu0 %1945 }
 0x83c   : > { %v1962_v10 = vadd.f32 %v1946_v23, %v1801_v55 }
 0x840   : > { %v2109_v37 = vpop.permute.xlu1 %2108 }
 0x841   : > { %v2118_v19 = vsel %vm1105_vm10, %v2107_v7, %v2109_v37 }
 0x842   : > { %v2115_v28 = vpop.permute.xlu0 %2114  ;;  %v2128_v26 = vadd.f32 %v2118_v19, %v1957_v61 }
 0x844   : > { %v2113_v39 = vpop.permute.xlu1 %2112  ;;  %v2147_v7 = vadd.f32 %v3611_v57, %v2128_v26 }
 0x845   : > { %v2120_v44 = vsel %vm1105_vm10, %v2113_v39, %v2115_v28  ;;  %v1959_v39 = vadd.f32 %v3615_v52, %v1798_v49 }
 0x846   : > { %v2111_v38 = vpop.permute.xlu0 %2110 }
 0x847   : > { %v2119_v15 = vsel %vm1105_vm10, %v2109_v37, %v2111_v38  ;;  %v2130_v53 = vadd.f32 %v2111_v38, %v1959_v39 }
 0x848   : > { %v1944_v2 = vpop.permute.xlu1 %1943 }
 0x849   : > { %v1949_v4 = vsel %vm904_vm8, %v1942_v30, %v1944_v2  ;;  %v1950_v14 = vsel %vm904_vm8, %v1944_v2, %v1946_v23  ;;  %v1958_v30 = vadd.f32 %v1948_v16, %v1797_v13  ;;  %vm2153_vm8 = vcmp.ge.f32.partialorder %v2147_v7, 0.0 }
 0x84a   : > { %v1960_v54 = vadd.f32 %v1949_v4, %v1799_v42  ;;  %v1961_v41 = vadd.f32 %v1950_v14, %v1800_v31  ;;  %v2695_v14 = vld [vmem:[%s3782_s10 + $0x10] sm:$0xff] }
 0x84b   : > { %v2129_v35 = vadd.f32 %v2119_v15, %v1958_v30 }
 0x84c   : > { %v2131_v6 = vadd.f32 %v2120_v44, %v1960_v54  ;;  %v2117_v9 = vpop.permute.xlu1 %2116  ;;  %v2698_v54 = vld [vmem:[%s3783_s11 + $0x18] sm:$0xff]  ;;  %v2697_v44 = vld [vmem:[%s3783_s11 + $0x10] sm:$0xff] }
 0x84d   : > { %v2133_v24 = vadd.f32 %v2117_v9, %v1962_v10  ;;  %v2121_v25 = vsel %vm1105_vm10, %v2115_v28, %v2117_v9  ;;  %v2148_v37 = vadd.f32 %v3611_v57, %v2129_v35  ;;  %v2693_v10 = vld [vmem:[%s3781_s9 + $0x8] sm:$0xff] }
 0x84e   : > { %v2150_v36 = vadd.f32 %v3613_v18, %v2131_v6  ;;  %v2132_v23 = vadd.f32 %v2121_v25, %v1961_v41 }
 0x84f   : > { %v2152_v8 = vadd.f32 %v3613_v18, %v2133_v24  ;;  %vm2154_vm10 = vcmp.ge.f32.partialorder %v2148_v37, 0.0 }
 0x850   : > { %v2175_v56 = vmul.f32 %v3617_v58, %v2150_v36  ;;  %vm2156_vm6 = vcmp.ge.f32.partialorder %v2150_v36, 0.0  ;;  %v2151_v48 = vadd.f32 %v3613_v18, %v2132_v23  ;;  %v2149_v18 = vadd.f32 %v3611_v57, %v2130_v53 }
 0x851   : > { %vm2158_vm5 = vcmp.ge.f32.partialorder %v2152_v8, 0.0  ;;  %v2177_v51 = vmul.f32 %v3617_v58, %v2152_v8 }
 0x852   : > { %v3656_v27 = vsel %vm2156_vm6, %v2150_v36, %v2175_v56  ;;  %v2176_v46 = vmul.f32 %v3617_v58, %v2151_v48  ;;  %vm2157_vm13 = vcmp.ge.f32.partialorder %v2151_v48, 0.0  ;;  %vm2155_vm14 = vcmp.ge.f32.partialorder %v2149_v18, 0.0  ;;  %v2696_v36 = vld [vmem:[%s3782_s10 + $0x18] sm:$0xff] }
 0x853   : > { %v3648_v45 = vsel %vm2158_vm5, %v2152_v8, %v2177_v51 }
 0x854   : > { %2200 = vrot.lane.b32.xlu0 %v3648_v45, %s3815_s28  ;;  %v3672_v28 = vsel %vm2157_vm13, %v2151_v48, %v2176_v46 }
 0x858   : > { %2196 = vrot.lane.b32.xlu0 %v3656_v27, %s3815_s28 }
 0x859   : > { %v2165_v50 = vpop.permute.xlu1 %2164 }
 0x85a   : > { %v2172_v60 = vmul.f32 %v2165_v50, %v2147_v7  ;;  %v2173_v62 = vmul.f32 %v2165_v50, %v2148_v37  ;;  %v2174_v52 = vmul.f32 %v2165_v50, %v2149_v18 }
 0x85c   : > { %v3662_v29 = vsel %vm2153_vm8, %v2147_v7, %v2172_v60  ;;  %v3664_v22 = vsel %vm2154_vm10, %v2148_v37, %v2173_v62  ;;  %v3676_v63 = vsel %vm2155_vm14, %v2149_v18, %v2174_v52 }
 0x85d   : > { %2190 = vrot.lane.b32.xlu1 %v3662_v29, %s3815_s28  ;;  %2192 = vrot.lane.b32.xlu0 %v3664_v22, %s3815_s28 }
 0x861   : > { %2198 = vrot.lane.b32.xlu1 %v3672_v28, %s3815_s28 }
 0x865   : > { %2194 = vrot.lane.b32.xlu1 %v3676_v63, %s3815_s28 }
 0x8c6   : > { %v2201_v58 = vpop.permute.xlu0 %2200 }
 0x8ca   : > { %v2197_v20 = vpop.permute.xlu0 %2196 }
 0x8cf   : > { %v2191_v42 = vpop.permute.xlu1 %2190  ;;  %v2193_v5 = vpop.permute.xlu0 %2192 }
 0x8d0   : > { %v2202_v21 = vsel %vm1188_vm2, %v2191_v42, %v2193_v5 }
 0x8d3   : > { %v2199_v43 = vpop.permute.xlu1 %2198 }
 0x8d4   : > { %v2204_v2 = vsel %vm1188_vm2, %v2197_v20, %v2199_v43  ;;  %v2205_v57 = vsel %vm1188_vm2, %v2199_v43, %v2201_v58 }
 0x8d5   : > { %v2213_v55 = vadd.f32 %v2205_v57, %v2204_v2 }
 0x8d7   : > { %v2195_v4 = vpop.permute.xlu1 %2194  ;;  %2214 = vadd.xlane.f32.xlu0 %v2213_v55 }
 0x8d8   : > { %v2203_v59 = vsel %vm1188_vm2, %v2193_v5, %v2195_v4 }
 0x8d9   : > { %v2210_v33 = vadd.f32 %v2203_v59, %v2202_v21 }
 0x8db   : > { %2211 = vadd.xlane.f32.xlu1 %v2210_v33 }
 0x8ec   : > { %2316 = vperm.xlu1 %2760, %v2698_v54  }
 0x8ed   : > { %2224 = vperm.xlu0 %2759, %v2693_v10  }
 0x8f1   : > { %2311 = vperm.xlu0 %2759, %v2697_v44  }
 0x960   : > { %v2215_v47 = vpop.xlane.xlu0 %2214 }
 0x961   : > { %v2217_v40 = vmul.f32 0.00390625, %v2215_v47 }
 0x963   : > { %2258 = vmatprep.subr.mxu1 %v2217_v40 }
 0x964   : > { %v2212_v6 = vpop.xlane.xlu1 %2211  ;;  %2259 = vmatpush1.msra.mxu1 %v2217_v40 }
 0x965   : > { %v2216_v9 = vmul.f32 0.00390625, %v2212_v6 }
 0x967   : > { %2260 = vmatprep.subr.mxu1 %v2216_v9 }
 0x968   : > { %2261 = vmatpush1.msra.mxu1 %v2216_v9  ;;  %v2225_v24 = vpop.permute.xlu0 %2224  ;;  %v2317_v30 = vpop.permute.xlu1 %2316 }
 0x969   : > { %2694 = vmatmul.mubr.msk.f32.vlgmr.msra.gmra.mxu1 %vm1213_vm3, %v2692_v32 }
 0x96a   : > { %2389 = vmatprep.mubr.f32.mxu1 %v2825_v0 }
 0x96c   : > { %v2312_v8 = vpop.permute.xlu0 %2311 }
 0xa29   : > { %v2296_v38 = vpop.f32.mrf.mxu1 }
 0xa2a   : > { %v2297_v34 = vadd.f32 %v2296_v38, %v2225_v24 }
 0xa2b   : > { %v2298_v12 = vpop.f32.mrf.mxu1 }
 0xa2c   : > { %v2299_v13 = vadd.f32 %v2298_v12, %v2225_v24  ;;  %v2301_v17 = vmax.f32 %v2297_v34, 0.0 }
 0xa2e   : > { %v2302_v16 = vmax.f32 %v2299_v13, 0.0 }
 0xa30   : > { %2355 = vmatprep.subr.mxu1 %v2302_v16 }
 0xa31   : > { %2356 = vmatpush1.msra.mxu1 %v2301_v17 }
 0xa32   : > { %2699 = vmatmul.mubr.msk.f32.vlgmr.msra.gmra.mxu1 %vm483_vm0, %v2695_v14 }
 0xa33   : > { %2395 = vmatprep.mubr.f32.mxu1 %v2825_v0 }
 0xa36   : > { %2700 = vmatmul.mubr.msk.f32.gmra.mxu1 %vm483_vm0, %v2696_v36 }
 0xaf2   : > { %v2391_v61 = vpop.f32.mrf.mxu1 }
 0xaf3   : > { %v2392_v19 = vadd.f32 %v2391_v61, %v2312_v8 }
 0xaf4   : > { %v2393_v15 = vpop.f32.mrf.mxu1 }
 0xaf5   : > { %v2394_v31 = vadd.f32 %v2393_v15, %v2312_v8  ;;  %v2402_v51 = vmul.f32 0.16666667, %v2392_v19 }
 0xaf6   : > { %v2397_v25 = vpop.f32.mrf.mxu1 }
 0xaf7   : > { %v2398_v1 = vadd.f32 %v2397_v25, %v2317_v30  ;;  %v2403_v26 = vmul.f32 0.16666667, %v2394_v31  ;;  %v2406_v0 = vadd.f32 0.5, %v2402_v51 }
 0xaf8   : > { %v2399_v41 = vpop.f32.mrf.mxu1 }
 0xaf9   : > { %v2404_v35 = vmul.f32 0.16666667, %v2398_v1  ;;  %v2400_v56 = vadd.f32 %v2399_v41, %v2317_v30  ;;  %v2407_v7 = vadd.f32 0.5, %v2403_v26  ;;  %v2410_v48 = vmax.f32 %v2406_v0, 0.0 }
 0xafb   : > { %v2408_v23 = vadd.f32 0.5, %v2404_v35  ;;  %v2405_v49 = vmul.f32 0.16666667, %v2400_v56  ;;  %v2411_v60 = vmax.f32 %v2407_v7, 0.0  ;;  %v2414_v46 = vmin.f32 %v2410_v48, 1.0 }
 0xafd   : > { %v2412_v37 = vmax.f32 %v2408_v23, 0.0  ;;  %v2409_v39 = vadd.f32 0.5, %v2405_v49  ;;  %v2415_v18 = vmin.f32 %v2411_v60, 1.0 }
 0xaff   : > { %v2416_v50 = vmin.f32 %v2412_v37, 1.0  ;;  %v2413_v53 = vmax.f32 %v2409_v39, 0.0 }
 0xb01   : > { %v2417_v62 = vmin.f32 %v2413_v53, 1.0  ;;  %2426 = vrot.lane.b32.xlu1 %v2416_v50, %s3816_s15 }
 0xb03   : > { %2428 = vrot.lane.b32.xlu0 %v2417_v62, %s3816_s15 }
 0xb05   : > { %2422 = vrot.lane.b32.xlu1 %v2414_v46, %s3816_s15 }
 0xb07   : > { %2424 = vrot.lane.b32.xlu0 %v2415_v18, %s3816_s15 }
 0xb73   : > { %v2427_v52 = vpop.permute.xlu1 %2426 }
 0xb74   : > { %v2441_v58 = vmul.f32 %v2427_v52, %v3656_v27 }
 0xb75   : > { %v2429_v20 = vpop.permute.xlu0 %2428 }
 0xb76   : > { %v2431_v42 = vsel %vm748_vm9, %v2427_v52, %v2429_v20  ;;  %2458 = vrot.lane.b32.xlu1 %v2441_v58, %s3815_s28  ;;  %v2443_v27 = vmul.f32 %v2429_v20, %v3648_v45 }
 0xb77   : > { %v2442_v43 = vmul.f32 %v2431_v42, %v3672_v28  ;;  %v2423_v2 = vpop.permute.xlu1 %2422  ;;  %v2703_v28 = vld [vmem:[%s3785_s13 + $0x8] sm:$0xff] }
 0xb78   : > { %v2438_v21 = vmul.f32 %v2423_v2, %v3662_v29  ;;  %v2701_v29 = vld [vmem:[%s3784_s12 + $0x8] sm:$0xff] }
 0xb79   : > { %v2425_v57 = vpop.permute.xlu0 %2424 }
 0xb7a   : > { %v2430_v5 = vsel %vm748_vm9, %v2423_v2, %v2425_v57  ;;  %2460 = vrot.lane.b32.xlu1 %v2442_v43, %s3815_s28  ;;  %v2440_v4 = vmul.f32 %v2425_v57, %v3676_v63 }
 0xb7b   : > { %v2439_v55 = vmul.f32 %v2430_v5, %v3664_v22 }
 0xb7d   : > { %2454 = vrot.lane.b32.xlu0 %v2439_v55, %s3815_s28 }
 0xb7e   : > { %2456 = vrot.lane.b32.xlu1 %v2440_v4, %s3815_s28 }
 0xb81   : > { %2462 = vrot.lane.b32.xlu0 %v2443_v27, %s3815_s28 }
 0xb82   : > { %2552 = vperm.xlu1 %2760, %v2703_v28  }
 0xb85   : > { %2452 = vrot.lane.b32.xlu0 %v2438_v21, %s3815_s28  ;;  %s458_s28 = sand.u32 1, %s2815_s30  }
 0xb86   : > { %s2637_s24 = sshll.u32 %s458_s28, 4  ;;  %s2560_s26 = scalar_lea.sflag [#allocation3], %s458_s28 }
 0xb87   : > { %s460_s18 = scalar_lea.vmem [#allocation2], %s2637_s24  ;;  %s2769_s24 = scalar_lea.vmem %s2768_s21, 512 }
 0xb88   : > { %s2574_s19 = sshll.u32 %s460_s18, 4  ;;  %s2575_s19 = int_to_ptr.vmem [resolvable:$true] %s2574_s19 }
 0xb89   : > { %s2763_s27 = scalar_lea.vmem %s2575_s19, 256  ;;  %p2770_p0 = scmp.lt.s32.totalorder %s2575_s19, %s2768_s21 }
 0xb8a   : > { %p2764_p11 = scmp.ne.s32.totalorder %s2575_s19, %s2763_s27  ;;  %p2771_p1 = scmp.lt.s32.totalorder %s2769_s24, %s2763_s27 }
 0xb8c   : > { %p2765_p12 = pnand %p2764_p11, %p2948_p5  ;;  %p2772_p2 = por %p2771_p1, %p2770_p0 }
 0xb8e   : > { %p2766_p13 = pneg %p2765_p12 }
 0xb90   : > { %p2773_p3 = pnand %p2772_p2, %p2766_p13 }
 0xbe8   : > { %v2459_v22 = vpop.permute.xlu1 %2458 }
 0xbec   : > { %v2461_v63 = vpop.permute.xlu1 %2460 }
 0xbed   : > { %v2466_v45 = vsel %vm1188_vm2, %v2459_v22, %v2461_v63 }
 0xbef   : > { %v2455_v59 = vpop.permute.xlu0 %2454 }
 0xbf0   : > { %v2457_v33 = vpop.permute.xlu1 %2456 }
 0xbf1   : > { %v2465_v44 = vsel %vm1188_vm2, %v2455_v59, %v2457_v33 }
 0xbf3   : > { %v2463_v54 = vpop.permute.xlu0 %2462 }
 0xbf4   : > { %v2467_v10 = vsel %vm1188_vm2, %v2461_v63, %v2463_v54 }
 0xbf5   : > { %2503 = vmatprep.subr.mxu0 %v2467_v10 }
 0xbf6   : > { %2504 = vmatpush1.msra.mxu0 %v2466_v45 }
 0xbf7   : > { %2505 = vmatprep.subr.mxu0 %v2465_v44  ;;  %v2453_v47 = vpop.permute.xlu0 %2452 }
 0xbf8   : > { %v2464_v40 = vsel %vm1188_vm2, %v2453_v47, %v2455_v59 }
 0xbf9   : > { %2506 = vmatpush1.msra.mxu0 %v2464_v40 }
 0xbfa   : > { %2702 = vmatmul.mubr.msk.f32.vlgmr.msra.gmra.mxu0 %vm1213_vm3, %v2701_v29 }
 0xbfd   : > { %v2553_v32 = vpop.permute.xlu1 %2552 }
 0xcba   : > { %v2541_v6 = vpop.f32.mrf.mxu0 }
 0xcbb   : > { %v2546_v9 = vadd.f32 %v2541_v6, %v3450_v11 }
 0xcbc   : > { %v2543_v38 = vpop.f32.mrf.mxu0 }
 0xcbd   : > { %v2555_v24 = vadd.f32 %v2553_v32, %v2546_v9  ;;  %v2547_v34 = vadd.f32 %v2543_v38, %v3448_v3 }
 0xcbf   : > { %2557 = vst [vmem:[%s460_s18] sm:$0xff] %v2555_v24  ;;  %v2556_v12 = vadd.f32 %v2553_v32, %v2547_v34 }
 0xcc1   : > { %2558 = vst [vmem:[%s460_s18 + $0x8] sm:$0xff] %v2556_v12 }
 0xcc2   : > { %2776 = shalt.err (!%p2773_p3)
}
 0xcc3   : > { %s2777_s0 = scalar_lea.hbm %s2572_s25, 256  ;;  %s2781_s18 = scalar_lea.hbm %s3786_s14, 512 }
 0xcc4   : > { %p2778_p4 = scmp.ne.s32.totalorder %s2572_s25, %s2777_s0  ;;  %p2782_p9 = scmp.lt.s32.totalorder %s2572_s25, %s3786_s14 }
 0xcc5   : > { %p2783_p10 = scmp.lt.s32.totalorder %s2781_s18, %s2777_s0 }
 0xcc6   : > { %p2779_p7 = pnand %p2778_p4, %p2948_p5 }
 0xcc7   : > { %p2784_p11 = por %p2783_p10, %p2782_p9 }
 0xcc8   : > { %p2780_p8 = pneg %p2779_p7 }
 0xcca   : > { %p2785_p12 = pnand %p2784_p11, %p2780_p8 }
 0xccc   : > { %2788 = shalt.err (!%p2785_p12)
}
 0xccd   : > { %2711 = dma.vmem_to_hbm [thread:$0]  (%p2948_p5), %s2575_s19, 256, %s2572_s25, %s2560_s26  }
 0xcce PF: > { %p2717_p13 = scmp.ge.s32.totalorder %s2823_s16, 2  ;;  %s2586_s17 = sand.u32 1, %s2811_s29  }
 0xccf   : > { %s2587_s21 = scalar_lea.sflag [#allocation3], %s2586_s17 }
 0xcd0   : > { %p2714_p0 = pnand %p2717_p13, %p2952_p6 }
 0xcd2   : > { %p2715_p1 = pneg %p2714_p0 }
 0xcd4   : > { %2806 = dma.done.wait (%p2715_p1), %s2587_s21, 256  }
 0xcd5   : > { %2808 = vsyncadd (%p2715_p1), %s2587_s21, 4294967040  ;;  %s3818_s16 = sld [smem:[#allocation6_spill]]  ;;  %s3821_s29 = smov %s2815_s30 }
 0xcd6   : > { %s3819_s0 = sld [smem:[#allocation5_spill]] }
 0xcd7   : > { %s3820_s15 = sld [smem:[#allocation7_spill]] }
 0xcdb   : > { %p24_p2 = scmp.ge.s32.totalorder %s3818_s16, 4  }
 0xcdc   : > { %s3822_s30 = smov %s3819_s0 }
 0xcdd   :  { %26 = sbr.rel (!%p24_p2) target bundleno = 5 (0x5), region = 139 }
 0xce2   :  { %2592 = vsyncpa [#allocation3], 1 }
 0xce3   :  { %2594 = vsyncpa [#allocation3 + $0x1], 1 }

</bundles_post_ra>
